<compile_context>
chip_gen: v7x
topology: tpu7x:2x2x1
jax: 0.10.0
libtpu: 0.0.40
codegen_flags: <defaults>
</compile_context>

<pallas_src>
import jax
import jax.numpy as jnp
from jax import lax
from jax.experimental import pallas as pl
from jax.experimental.pallas import tpu as pltpu


def _round_up(x, m):
    return (x + m - 1) // m * m


def _make_resblock_kernel(H, W, C):
    HW = H * W
    PAD = _round_up(W + 1, 128)      # halo >= W+1 on each side, lane aligned
    XLEN = 2 * PAD + HW

    def kernel(x_ref, w1_ref, b1_ref, w2_ref, b2_ref, m_ref, out_ref,
               xbuf, colbuf):
        # x_ref  : (1, C, HW)  f32   NCHW with spatial flattened (lane-dense)
        # w?_ref : (C, 9*C)    bf16  (Cout, tap-major*Cin) im2col weight layout
        # b?_ref : (C, 1)      f32
        # m_ref  : (2, HW)     bf16  [left, right] column masks (W wraparound)
        # out_ref: (1, C, HW)  f32
        # xbuf   : (C, XLEN)   bf16  padded flat activations; zero halos
        # colbuf : (9*C, HW)   bf16  im2col slab (contraction along sublanes)

        # Zero only the halos, every step (megacore-safe: a core split off the
        # "parallel" batch axis may never see program_id == 0).  The interior
        # is always fully overwritten below.
        zhalo = jnp.zeros((C, PAD), jnp.bfloat16)
        xbuf[:, :PAD] = zhalo
        xbuf[:, PAD + HW:] = zhalo

        m_left = m_ref[0:1, :]                          # (1, HW) bf16
        m_right = m_ref[1:2, :]

        def build_cols():
            # Copy the 9 shifted windows into the im2col slab; the dj=0/dj=2
            # masks kill the flat-layout W wraparound at zero marginal cost
            # (applied once here, not per matmul).
            for di in range(3):
                for dj in range(3):
                    t = di * 3 + dj
                    s = PAD + (di - 1) * W + (dj - 1)
                    win = xbuf[:, s:s + HW]             # (C, HW) bf16
                    if dj == 0:                         # left neighbour of w=0
                        win = win * m_left
                    elif dj == 2:                       # right neighbour of w=W-1
                        win = win * m_right
                    colbuf[t * C:(t + 1) * C, :] = win

        # ---- conv1 + bias + ReLU ------------------------------------------
        xbuf[:, PAD:PAD + HW] = x_ref[0].astype(jnp.bfloat16)
        build_cols()
        acc1 = jnp.dot(w1_ref[...], colbuf[...],
                       preferred_element_type=jnp.float32)    # (C, HW) f32
        y1 = jnp.maximum(acc1 + b1_ref[...], 0.0)

        # ---- conv2 + bias + residual --------------------------------------
        xbuf[:, PAD:PAD + HW] = y1.astype(jnp.bfloat16)   # reuse padded buffer
        build_cols()
        acc2 = jnp.dot(w2_ref[...], colbuf[...],
                       preferred_element_type=jnp.float32)
        # Residual: re-read x_ref here (instead of holding x live across both
        # convs) and fuse bias2 into the same element-wise pass.
        out_ref[0] = (acc2 + x_ref[0] + b2_ref[...]).astype(out_ref.dtype)

    return kernel, XLEN


@jax.jit
def residual_block_nobn_last(x, w1, b1, w2, b2):
    """x: (N, C, H, W); w: (Cout, Cin, 3, 3) (PyTorch OIHW); b: (Cout,)."""
    N, C, H, W = x.shape
    HW = H * W
    kernel, XLEN = _make_resblock_kernel(H, W, C)

    # Free layout change only (no pad / transpose / extra HBM passes).
    x_flat = x.reshape(N, C, HW)

    def prep_w(w):
        # (O, I, kh, kw) -> (O, kh, kw, I) -> (O, 9*I), bf16 for the MXU.
        # Column block t = di*3 + dj at rows t*C + i matches the im2col slab.
        return jnp.transpose(w, (0, 2, 3, 1)).reshape(C, 9 * C).astype(jnp.bfloat16)

    w1k, w2k = prep_w(w1), prep_w(w2)
    b1k = b1.reshape(C, 1).astype(jnp.float32)
    b2k = b2.reshape(C, 1).astype(jnp.float32)

    # Column masks: flat-layout "left/right neighbour" taps wrap across rows;
    # dj=0 is garbage at w==0, dj=2 at w==W-1.
    col = jnp.arange(HW, dtype=jnp.int32) % W
    masks = jnp.stack([(col != 0), (col != W - 1)],
                      axis=0).astype(jnp.bfloat16)       # (2, HW)

    out_flat = pl.pallas_call(
        kernel,
        out_shape=jax.ShapeDtypeStruct((N, C, HW), x.dtype),
        grid_spec=pltpu.PrefetchScalarGridSpec(
            num_scalar_prefetch=0,
            grid=(N,),
            in_specs=[
                pl.BlockSpec((1, C, HW), lambda n: (n, 0, 0)),
                pl.BlockSpec((C, 9 * C), lambda n: (0, 0)),
                pl.BlockSpec((C, 1), lambda n: (0, 0)),
                pl.BlockSpec((C, 9 * C), lambda n: (0, 0)),
                pl.BlockSpec((C, 1), lambda n: (0, 0)),
                pl.BlockSpec((2, HW), lambda n: (0, 0)),
            ],
            out_specs=pl.BlockSpec((1, C, HW), lambda n: (n, 0, 0)),
            scratch_shapes=[pltpu.VMEM((C, XLEN), jnp.bfloat16),
                            pltpu.VMEM((9 * C, HW), jnp.bfloat16)],
        ),
        compiler_params=pltpu.CompilerParams(
            dimension_semantics=("parallel",)),
    )(x_flat, w1k, b1k, w2k, b2k, masks)

    return out_flat.reshape(N, C, H, W)


def _reference(x, w1, b1, w2, b2):
    """Pure-JAX f32 reference matching the PyTorch forward (NCHW)."""
    dn = ("NCHW", "OIHW", "NCHW")
    y = lax.conv_general_dilated(x, w1, (1, 1), "SAME", dimension_numbers=dn)
    y = jnp.maximum(y + b1[None, :, None, None], 0.0)
    y = lax.conv_general_dilated(y, w2, (1, 1), "SAME", dimension_numbers=dn)
    return x + y + b2[None, :, None, None]


if __name__ == "__main__":
    nf = 64                  # module default
    N, H, W = 2, 16, 16

    key = jax.random.PRNGKey(0)
    kx, kw1, kw2, kb1, kb2 = jax.random.split(key, 5)

    # kaiming_normal_(a=0, mode='fan_in'): std = sqrt(2 / (Cin*kh*kw)), x0.1.
    fan_in = nf * 3 * 3
    std = (2.0 / fan_in) ** 0.5
    w1 = jax.random.normal(kw1, (nf, nf, 3, 3), jnp.float32) * std * 0.1
    w2 = jax.random.normal(kw2, (nf, nf, 3, 3), jnp.float32) * std * 0.1
    # Small non-zero biases to exercise the bias path (module zeroes them at
    # init, but the forward must handle arbitrary bias values).
    b1 = jax.random.normal(kb1, (nf,), jnp.float32) * 0.01
    b2 = jax.random.normal(kb2, (nf,), jnp.float32) * 0.01

    x = jax.random.normal(kx, (N, nf, H, W), jnp.float32)

    out = jax.block_until_ready(residual_block_nobn_last(x, w1, b1, w2, b2))
    ref = jax.block_until_ready(_reference(x, w1, b1, w2, b2))

    assert out.shape == ref.shape and out.dtype == ref.dtype
    # bf16 matmul inputs / f32 accumulation -> loosened tolerance vs f32 ref.
    assert jnp.allclose(out, ref, atol=1e-2, rtol=1e-2), "mismatch vs reference"

    print("KERNEL_OK")
</pallas_src>

<mosaic_0001>
module attributes {stable_mosaic.version = 11 : i64} {
  func.func @kernel(%arg0: i32, %arg1: memref<1x64x256xf32, #tpu.memory_space<vmem>>, %arg2: memref<64x576xbf16, #tpu.memory_space<vmem>>, %arg3: memref<64x1xf32, #tpu.memory_space<vmem>>, %arg4: memref<64x576xbf16, #tpu.memory_space<vmem>>, %arg5: memref<64x1xf32, #tpu.memory_space<vmem>>, %arg6: memref<2x256xbf16, #tpu.memory_space<vmem>>, %arg7: memref<1x64x256xf32, #tpu.memory_space<vmem>>, %arg8: memref<64x512xbf16, #tpu.memory_space<vmem>>, %arg9: memref<576x256xbf16, #tpu.memory_space<vmem>>) attributes {dimension_semantics = [#tpu.dimension_semantics<parallel>], iteration_bounds = array<i64: 2>, scalar_prefetch = 0 : i64, scratch_operands = 2 : i64, tpu.core_type = #tpu.core_type<tc>, window_params = [{transform_indices = @transform_0, window_bounds = array<i64: 1, 64, 256>}, {pipeline_mode = #tpu.pipeline_mode<synchronous>, transform_indices = @transform_1, window_bounds = array<i64: 64, 576>}, {pipeline_mode = #tpu.pipeline_mode<synchronous>, transform_indices = @transform_2, window_bounds = array<i64: 64, 1>}, {pipeline_mode = #tpu.pipeline_mode<synchronous>, transform_indices = @transform_3, window_bounds = array<i64: 64, 576>}, {pipeline_mode = #tpu.pipeline_mode<synchronous>, transform_indices = @transform_4, window_bounds = array<i64: 64, 1>}, {pipeline_mode = #tpu.pipeline_mode<synchronous>, transform_indices = @transform_5, window_bounds = array<i64: 2, 256>}, {transform_indices = @transform_6, window_bounds = array<i64: 1, 64, 256>}]} {
    %cst = arith.constant 0.000000e+00 : bf16
    %0 = vector.broadcast %cst : bf16 to vector<64x128xbf16>
    %c0 = arith.constant 0 : index
    %c0_0 = arith.constant 0 : index
    %1 = vector.load %arg8[%c0, %c0_0] : memref<64x512xbf16, #tpu.memory_space<vmem>>, vector<64x128xbf16>
    tpu.vector_store %arg8[%c0, %c0_0], %0 {strides = array<i32>} : memref<64x512xbf16, #tpu.memory_space<vmem>>, vector<64x128xbf16>,
    %c0_1 = arith.constant 0 : index
    %c384 = arith.constant 384 : index
    %2 = vector.load %arg8[%c0_1, %c384] : memref<64x512xbf16, #tpu.memory_space<vmem>>, vector<64x128xbf16>
    tpu.vector_store %arg8[%c0_1, %c384], %0 {strides = array<i32>} : memref<64x512xbf16, #tpu.memory_space<vmem>>, vector<64x128xbf16>,
    %c0_2 = arith.constant 0 : index
    %c0_3 = arith.constant 0 : index
    %3 = vector.load %arg6[%c0_2, %c0_3] : memref<2x256xbf16, #tpu.memory_space<vmem>>, vector<1x256xbf16>
    %c1 = arith.constant 1 : index
    %c0_4 = arith.constant 0 : index
    %4 = vector.load %arg6[%c1, %c0_4] : memref<2x256xbf16, #tpu.memory_space<vmem>>, vector<1x256xbf16>
    %c0_5 = arith.constant 0 : index
    %c0_6 = arith.constant 0 : index
    %c0_7 = arith.constant 0 : index
    %5 = vector.load %arg1[%c0_5, %c0_6, %c0_7] : memref<1x64x256xf32, #tpu.memory_space<vmem>>, vector<1x64x256xf32>
    %6 = vector.shape_cast %5 : vector<1x64x256xf32> to vector<64x256xf32>
    %7 = arith.truncf %6 : vector<64x256xf32> to vector<64x256xbf16>
    %c0_8 = arith.constant 0 : index
    %c128 = arith.constant 128 : index
    %8 = vector.load %arg8[%c0_8, %c128] : memref<64x512xbf16, #tpu.memory_space<vmem>>, vector<64x256xbf16>
    tpu.vector_store %arg8[%c0_8, %c128], %7 {strides = array<i32>} : memref<64x512xbf16, #tpu.memory_space<vmem>>, vector<64x256xbf16>,
    %c0_9 = arith.constant 0 : index
    %c111 = arith.constant 111 : index
    %9 = vector.load %arg8[%c0_9, %c111] : memref<64x512xbf16, #tpu.memory_space<vmem>>, vector<64x256xbf16>
    %10 = vector.broadcast %3 : vector<1x256xbf16> to vector<64x256xbf16>
    %11 = arith.mulf %9, %10 : vector<64x256xbf16>
    %c0_10 = arith.constant 0 : index
    %c0_11 = arith.constant 0 : index
    %12 = vector.load %arg9[%c0_10, %c0_11] : memref<576x256xbf16, #tpu.memory_space<vmem>>, vector<64x256xbf16>
    tpu.vector_store %arg9[%c0_10, %c0_11], %11 {strides = array<i32>} : memref<576x256xbf16, #tpu.memory_space<vmem>>, vector<64x256xbf16>,
    %c0_12 = arith.constant 0 : index
    %c112 = arith.constant 112 : index
    %13 = vector.load %arg8[%c0_12, %c112] : memref<64x512xbf16, #tpu.memory_space<vmem>>, vector<64x256xbf16>
    %c64 = arith.constant 64 : index
    %c0_13 = arith.constant 0 : index
    %14 = vector.load %arg9[%c64, %c0_13] : memref<576x256xbf16, #tpu.memory_space<vmem>>, vector<64x256xbf16>
    tpu.vector_store %arg9[%c64, %c0_13], %13 {strides = array<i32>} : memref<576x256xbf16, #tpu.memory_space<vmem>>, vector<64x256xbf16>,
    %c0_14 = arith.constant 0 : index
    %c113 = arith.constant 113 : index
    %15 = vector.load %arg8[%c0_14, %c113] : memref<64x512xbf16, #tpu.memory_space<vmem>>, vector<64x256xbf16>
    %16 = vector.broadcast %4 : vector<1x256xbf16> to vector<64x256xbf16>
    %17 = arith.mulf %15, %16 : vector<64x256xbf16>
    %c128_15 = arith.constant 128 : index
    %c0_16 = arith.constant 0 : index
    %18 = vector.load %arg9[%c128_15, %c0_16] : memref<576x256xbf16, #tpu.memory_space<vmem>>, vector<64x256xbf16>
    tpu.vector_store %arg9[%c128_15, %c0_16], %17 {strides = array<i32>} : memref<576x256xbf16, #tpu.memory_space<vmem>>, vector<64x256xbf16>,
    %c0_17 = arith.constant 0 : index
    %c127 = arith.constant 127 : index
    %19 = vector.load %arg8[%c0_17, %c127] : memref<64x512xbf16, #tpu.memory_space<vmem>>, vector<64x256xbf16>
    %20 = vector.broadcast %3 : vector<1x256xbf16> to vector<64x256xbf16>
    %21 = arith.mulf %19, %20 : vector<64x256xbf16>
    %c192 = arith.constant 192 : index
    %c0_18 = arith.constant 0 : index
    %22 = vector.load %arg9[%c192, %c0_18] : memref<576x256xbf16, #tpu.memory_space<vmem>>, vector<64x256xbf16>
    tpu.vector_store %arg9[%c192, %c0_18], %21 {strides = array<i32>} : memref<576x256xbf16, #tpu.memory_space<vmem>>, vector<64x256xbf16>,
    %c0_19 = arith.constant 0 : index
    %c128_20 = arith.constant 128 : index
    %23 = vector.load %arg8[%c0_19, %c128_20] : memref<64x512xbf16, #tpu.memory_space<vmem>>, vector<64x256xbf16>
    %c256 = arith.constant 256 : index
    %c0_21 = arith.constant 0 : index
    %24 = vector.load %arg9[%c256, %c0_21] : memref<576x256xbf16, #tpu.memory_space<vmem>>, vector<64x256xbf16>
    tpu.vector_store %arg9[%c256, %c0_21], %23 {strides = array<i32>} : memref<576x256xbf16, #tpu.memory_space<vmem>>, vector<64x256xbf16>,
    %c0_22 = arith.constant 0 : index
    %c129 = arith.constant 129 : index
    %25 = vector.load %arg8[%c0_22, %c129] : memref<64x512xbf16, #tpu.memory_space<vmem>>, vector<64x256xbf16>
    %26 = vector.broadcast %4 : vector<1x256xbf16> to vector<64x256xbf16>
    %27 = arith.mulf %25, %26 : vector<64x256xbf16>
    %c320 = arith.constant 320 : index
    %c0_23 = arith.constant 0 : index
    %28 = vector.load %arg9[%c320, %c0_23] : memref<576x256xbf16, #tpu.memory_space<vmem>>, vector<64x256xbf16>
    tpu.vector_store %arg9[%c320, %c0_23], %27 {strides = array<i32>} : memref<576x256xbf16, #tpu.memory_space<vmem>>, vector<64x256xbf16>,
    %c0_24 = arith.constant 0 : index
    %c143 = arith.constant 143 : index
    %29 = vector.load %arg8[%c0_24, %c143] : memref<64x512xbf16, #tpu.memory_space<vmem>>, vector<64x256xbf16>
    %30 = vector.broadcast %3 : vector<1x256xbf16> to vector<64x256xbf16>
    %31 = arith.mulf %29, %30 : vector<64x256xbf16>
    %c384_25 = arith.constant 384 : index
    %c0_26 = arith.constant 0 : index
    %32 = vector.load %arg9[%c384_25, %c0_26] : memref<576x256xbf16, #tpu.memory_space<vmem>>, vector<64x256xbf16>
    tpu.vector_store %arg9[%c384_25, %c0_26], %31 {strides = array<i32>} : memref<576x256xbf16, #tpu.memory_space<vmem>>, vector<64x256xbf16>,
    %c0_27 = arith.constant 0 : index
    %c144 = arith.constant 144 : index
    %33 = vector.load %arg8[%c0_27, %c144] : memref<64x512xbf16, #tpu.memory_space<vmem>>, vector<64x256xbf16>
    %c448 = arith.constant 448 : index
    %c0_28 = arith.constant 0 : index
    %34 = vector.load %arg9[%c448, %c0_28] : memref<576x256xbf16, #tpu.memory_space<vmem>>, vector<64x256xbf16>
    tpu.vector_store %arg9[%c448, %c0_28], %33 {strides = array<i32>} : memref<576x256xbf16, #tpu.memory_space<vmem>>, vector<64x256xbf16>,
    %c0_29 = arith.constant 0 : index
    %c145 = arith.constant 145 : index
    %35 = vector.load %arg8[%c0_29, %c145] : memref<64x512xbf16, #tpu.memory_space<vmem>>, vector<64x256xbf16>
    %36 = vector.broadcast %4 : vector<1x256xbf16> to vector<64x256xbf16>
    %37 = arith.mulf %35, %36 : vector<64x256xbf16>
    %c512 = arith.constant 512 : index
    %c0_30 = arith.constant 0 : index
    %38 = vector.load %arg9[%c512, %c0_30] : memref<576x256xbf16, #tpu.memory_space<vmem>>, vector<64x256xbf16>
    tpu.vector_store %arg9[%c512, %c0_30], %37 {strides = array<i32>} : memref<576x256xbf16, #tpu.memory_space<vmem>>, vector<64x256xbf16>,
    %c0_31 = arith.constant 0 : index
    %c0_32 = arith.constant 0 : index
    %39 = vector.load %arg2[%c0_31, %c0_32] : memref<64x576xbf16, #tpu.memory_space<vmem>>, vector<64x576xbf16>
    %c0_33 = arith.constant 0 : index
    %c0_34 = arith.constant 0 : index
    %40 = vector.load %arg9[%c0_33, %c0_34] : memref<576x256xbf16, #tpu.memory_space<vmem>>, vector<576x256xbf16>
    %cst_35 = arith.constant dense<0.000000e+00> : vector<64x256xf32>
    %41 = tpu.matmul %39, %40, %cst_35 {dimension_numbers = #tpu.dot_dimension_numbers<[1], [0], [0], [1], [0, 0, 1, 1], [], []>} : vector<64x576xbf16>, vector<576x256xbf16>, vector<64x256xf32> -> vector<64x256xf32>
    %c0_36 = arith.constant 0 : index
    %c0_37 = arith.constant 0 : index
    %42 = vector.load %arg3[%c0_36, %c0_37] : memref<64x1xf32, #tpu.memory_space<vmem>>, vector<64x1xf32>
    %43 = vector.broadcast %42 : vector<64x1xf32> to vector<64x256xf32>
    %44 = arith.addf %41, %43 : vector<64x256xf32>
    %cst_38 = arith.constant 0.000000e+00 : f32
    %45 = vector.broadcast %cst_38 : f32 to vector<64x256xf32>
    %46 = arith.maximumf %44, %45 : vector<64x256xf32>
    %47 = arith.truncf %46 : vector<64x256xf32> to vector<64x256xbf16>
    %c0_39 = arith.constant 0 : index
    %c128_40 = arith.constant 128 : index
    %48 = vector.load %arg8[%c0_39, %c128_40] : memref<64x512xbf16, #tpu.memory_space<vmem>>, vector<64x256xbf16>
    tpu.vector_store %arg8[%c0_39, %c128_40], %47 {strides = array<i32>} : memref<64x512xbf16, #tpu.memory_space<vmem>>, vector<64x256xbf16>,
    %c0_41 = arith.constant 0 : index
    %c111_42 = arith.constant 111 : index
    %49 = vector.load %arg8[%c0_41, %c111_42] : memref<64x512xbf16, #tpu.memory_space<vmem>>, vector<64x256xbf16>
    %50 = vector.broadcast %3 : vector<1x256xbf16> to vector<64x256xbf16>
    %51 = arith.mulf %49, %50 : vector<64x256xbf16>
    %c0_43 = arith.constant 0 : index
    %c0_44 = arith.constant 0 : index
    %52 = vector.load %arg9[%c0_43, %c0_44] : memref<576x256xbf16, #tpu.memory_space<vmem>>, vector<64x256xbf16>
    tpu.vector_store %arg9[%c0_43, %c0_44], %51 {strides = array<i32>} : memref<576x256xbf16, #tpu.memory_space<vmem>>, vector<64x256xbf16>,
    %c0_45 = arith.constant 0 : index
    %c112_46 = arith.constant 112 : index
    %53 = vector.load %arg8[%c0_45, %c112_46] : memref<64x512xbf16, #tpu.memory_space<vmem>>, vector<64x256xbf16>
    %c64_47 = arith.constant 64 : index
    %c0_48 = arith.constant 0 : index
    %54 = vector.load %arg9[%c64_47, %c0_48] : memref<576x256xbf16, #tpu.memory_space<vmem>>, vector<64x256xbf16>
    tpu.vector_store %arg9[%c64_47, %c0_48], %53 {strides = array<i32>} : memref<576x256xbf16, #tpu.memory_space<vmem>>, vector<64x256xbf16>,
    %c0_49 = arith.constant 0 : index
    %c113_50 = arith.constant 113 : index
    %55 = vector.load %arg8[%c0_49, %c113_50] : memref<64x512xbf16, #tpu.memory_space<vmem>>, vector<64x256xbf16>
    %56 = vector.broadcast %4 : vector<1x256xbf16> to vector<64x256xbf16>
    %57 = arith.mulf %55, %56 : vector<64x256xbf16>
    %c128_51 = arith.constant 128 : index
    %c0_52 = arith.constant 0 : index
    %58 = vector.load %arg9[%c128_51, %c0_52] : memref<576x256xbf16, #tpu.memory_space<vmem>>, vector<64x256xbf16>
    tpu.vector_store %arg9[%c128_51, %c0_52], %57 {strides = array<i32>} : memref<576x256xbf16, #tpu.memory_space<vmem>>, vector<64x256xbf16>,
    %c0_53 = arith.constant 0 : index
    %c127_54 = arith.constant 127 : index
    %59 = vector.load %arg8[%c0_53, %c127_54] : memref<64x512xbf16, #tpu.memory_space<vmem>>, vector<64x256xbf16>
    %60 = vector.broadcast %3 : vector<1x256xbf16> to vector<64x256xbf16>
    %61 = arith.mulf %59, %60 : vector<64x256xbf16>
    %c192_55 = arith.constant 192 : index
    %c0_56 = arith.constant 0 : index
    %62 = vector.load %arg9[%c192_55, %c0_56] : memref<576x256xbf16, #tpu.memory_space<vmem>>, vector<64x256xbf16>
    tpu.vector_store %arg9[%c192_55, %c0_56], %61 {strides = array<i32>} : memref<576x256xbf16, #tpu.memory_space<vmem>>, vector<64x256xbf16>,
    %c0_57 = arith.constant 0 : index
    %c128_58 = arith.constant 128 : index
    %63 = vector.load %arg8[%c0_57, %c128_58] : memref<64x512xbf16, #tpu.memory_space<vmem>>, vector<64x256xbf16>
    %c256_59 = arith.constant 256 : index
    %c0_60 = arith.constant 0 : index
    %64 = vector.load %arg9[%c256_59, %c0_60] : memref<576x256xbf16, #tpu.memory_space<vmem>>, vector<64x256xbf16>
    tpu.vector_store %arg9[%c256_59, %c0_60], %63 {strides = array<i32>} : memref<576x256xbf16, #tpu.memory_space<vmem>>, vector<64x256xbf16>,
    %c0_61 = arith.constant 0 : index
    %c129_62 = arith.constant 129 : index
    %65 = vector.load %arg8[%c0_61, %c129_62] : memref<64x512xbf16, #tpu.memory_space<vmem>>, vector<64x256xbf16>
    %66 = vector.broadcast %4 : vector<1x256xbf16> to vector<64x256xbf16>
    %67 = arith.mulf %65, %66 : vector<64x256xbf16>
    %c320_63 = arith.constant 320 : index
    %c0_64 = arith.constant 0 : index
    %68 = vector.load %arg9[%c320_63, %c0_64] : memref<576x256xbf16, #tpu.memory_space<vmem>>, vector<64x256xbf16>
    tpu.vector_store %arg9[%c320_63, %c0_64], %67 {strides = array<i32>} : memref<576x256xbf16, #tpu.memory_space<vmem>>, vector<64x256xbf16>,
    %c0_65 = arith.constant 0 : index
    %c143_66 = arith.constant 143 : index
    %69 = vector.load %arg8[%c0_65, %c143_66] : memref<64x512xbf16, #tpu.memory_space<vmem>>, vector<64x256xbf16>
    %70 = vector.broadcast %3 : vector<1x256xbf16> to vector<64x256xbf16>
    %71 = arith.mulf %69, %70 : vector<64x256xbf16>
    %c384_67 = arith.constant 384 : index
    %c0_68 = arith.constant 0 : index
    %72 = vector.load %arg9[%c384_67, %c0_68] : memref<576x256xbf16, #tpu.memory_space<vmem>>, vector<64x256xbf16>
    tpu.vector_store %arg9[%c384_67, %c0_68], %71 {strides = array<i32>} : memref<576x256xbf16, #tpu.memory_space<vmem>>, vector<64x256xbf16>,
    %c0_69 = arith.constant 0 : index
    %c144_70 = arith.constant 144 : index
    %73 = vector.load %arg8[%c0_69, %c144_70] : memref<64x512xbf16, #tpu.memory_space<vmem>>, vector<64x256xbf16>
    %c448_71 = arith.constant 448 : index
    %c0_72 = arith.constant 0 : index
    %74 = vector.load %arg9[%c448_71, %c0_72] : memref<576x256xbf16, #tpu.memory_space<vmem>>, vector<64x256xbf16>
    tpu.vector_store %arg9[%c448_71, %c0_72], %73 {strides = array<i32>} : memref<576x256xbf16, #tpu.memory_space<vmem>>, vector<64x256xbf16>,
    %c0_73 = arith.constant 0 : index
    %c145_74 = arith.constant 145 : index
    %75 = vector.load %arg8[%c0_73, %c145_74] : memref<64x512xbf16, #tpu.memory_space<vmem>>, vector<64x256xbf16>
    %76 = vector.broadcast %4 : vector<1x256xbf16> to vector<64x256xbf16>
    %77 = arith.mulf %75, %76 : vector<64x256xbf16>
    %c512_75 = arith.constant 512 : index
    %c0_76 = arith.constant 0 : index
    %78 = vector.load %arg9[%c512_75, %c0_76] : memref<576x256xbf16, #tpu.memory_space<vmem>>, vector<64x256xbf16>
    tpu.vector_store %arg9[%c512_75, %c0_76], %77 {strides = array<i32>} : memref<576x256xbf16, #tpu.memory_space<vmem>>, vector<64x256xbf16>,
    %c0_77 = arith.constant 0 : index
    %c0_78 = arith.constant 0 : index
    %79 = vector.load %arg4[%c0_77, %c0_78] : memref<64x576xbf16, #tpu.memory_space<vmem>>, vector<64x576xbf16>
    %c0_79 = arith.constant 0 : index
    %c0_80 = arith.constant 0 : index
    %80 = vector.load %arg9[%c0_79, %c0_80] : memref<576x256xbf16, #tpu.memory_space<vmem>>, vector<576x256xbf16>
    %cst_81 = arith.constant dense<0.000000e+00> : vector<64x256xf32>
    %81 = tpu.matmul %79, %80, %cst_81 {dimension_numbers = #tpu.dot_dimension_numbers<[1], [0], [0], [1], [0, 0, 1, 1], [], []>} : vector<64x576xbf16>, vector<576x256xbf16>, vector<64x256xf32> -> vector<64x256xf32>
    %c0_82 = arith.constant 0 : index
    %c0_83 = arith.constant 0 : index
    %c0_84 = arith.constant 0 : index
    %82 = vector.load %arg1[%c0_82, %c0_83, %c0_84] : memref<1x64x256xf32, #tpu.memory_space<vmem>>, vector<1x64x256xf32>
    %83 = vector.shape_cast %82 : vector<1x64x256xf32> to vector<64x256xf32>
    %84 = arith.addf %81, %83 : vector<64x256xf32>
    %c0_85 = arith.constant 0 : index
    %c0_86 = arith.constant 0 : index
    %85 = vector.load %arg5[%c0_85, %c0_86] : memref<64x1xf32, #tpu.memory_space<vmem>>, vector<64x1xf32>
    %86 = vector.broadcast %85 : vector<64x1xf32> to vector<64x256xf32>
    %87 = arith.addf %84, %86 : vector<64x256xf32>
    %c0_87 = arith.constant 0 : index
    %c0_88 = arith.constant 0 : index
    %c0_89 = arith.constant 0 : index
    %88 = vector.load %arg7[%c0_87, %c0_88, %c0_89] : memref<1x64x256xf32, #tpu.memory_space<vmem>>, vector<1x64x256xf32>
    %89 = vector.shape_cast %88 : vector<1x64x256xf32> to vector<64x256xf32>
    %90 = vector.shape_cast %87 : vector<64x256xf32> to vector<1x64x256xf32>
    tpu.vector_store %arg7[%c0_87, %c0_88, %c0_89], %90 {strides = array<i32>} : memref<1x64x256xf32, #tpu.memory_space<vmem>>, vector<1x64x256xf32>,
    return
  }
  func.func @transform_0(%arg0: i32) -> (i32, i32, i32) {
    %c0_i32 = arith.constant 0 : i32
    %c0_i32_0 = arith.constant 0 : i32
    %c0_i32_1 = arith.constant 0 : i32
    return %arg0, %c0_i32, %c0_i32_0 : i32, i32, i32
  }
  func.func @transform_1(%arg0: i32) -> (i32, i32) {
    %c0_i32 = arith.constant 0 : i32
    %c0_i32_0 = arith.constant 0 : i32
    %c0_i32_1 = arith.constant 0 : i32
    return %c0_i32, %c0_i32_0 : i32, i32
  }
  func.func @transform_2(%arg0: i32) -> (i32, i32) {
    %c0_i32 = arith.constant 0 : i32
    %c0_i32_0 = arith.constant 0 : i32
    %c0_i32_1 = arith.constant 0 : i32
    return %c0_i32, %c0_i32_0 : i32, i32
  }
  func.func @transform_3(%arg0: i32) -> (i32, i32) {
    %c0_i32 = arith.constant 0 : i32
    %c0_i32_0 = arith.constant 0 : i32
    %c0_i32_1 = arith.constant 0 : i32
    return %c0_i32, %c0_i32_0 : i32, i32
  }
  func.func @transform_4(%arg0: i32) -> (i32, i32) {
    %c0_i32 = arith.constant 0 : i32
    %c0_i32_0 = arith.constant 0 : i32
    %c0_i32_1 = arith.constant 0 : i32
    return %c0_i32, %c0_i32_0 : i32, i32
  }
  func.func @transform_5(%arg0: i32) -> (i32, i32) {
    %c0_i32 = arith.constant 0 : i32
    %c0_i32_0 = arith.constant 0 : i32
    %c0_i32_1 = arith.constant 0 : i32
    return %c0_i32, %c0_i32_0 : i32, i32
  }
  func.func @transform_6(%arg0: i32) -> (i32, i32, i32) {
    %c0_i32 = arith.constant 0 : i32
    %c0_i32_0 = arith.constant 0 : i32
    %c0_i32_1 = arith.constant 0 : i32
    return %arg0, %c0_i32, %c0_i32_0 : i32, i32, i32
  }
}

</mosaic_0001>

<bundles_post_ra>
// kernel: residual_block_nobn_last.1
= control target key start
LH: loop header
LB: loop body
LE: loop exit
PB: predicated region body
PF: predicated region fallthrough
CT: control target
= control target key end

     0   :  { %s3136_s21 = smov 0   ;;  %s4193_s0 = inlined_call_operand.vmem [shape: f32[2,64,256], index: 0, kind: input, shape index: {}]   ;;  %s4194_s1 = inlined_call_operand.vmem [shape: bf16[64,576], index: 1, kind: input, shape index: {}]   ;;  %s4195_s2 = inlined_call_operand.vmem [shape: f32[64,1], index: 2, kind: input, shape index: {}]   ;;  %s4196_s3 = inlined_call_operand.vmem [shape: bf16[64,576], index: 3, kind: input, shape index: {}]   ;;  %s4197_s4 = inlined_call_operand.vmem [shape: f32[64,1], index: 4, kind: input, shape index: {}]   ;;  %s4198_s5 = inlined_call_operand.vmem [shape: bf16[2,256], index: 5, kind: input, shape index: {}]   ;;  %s4199_s6 = inlined_call_operand.vmem [shape: f32[2,64,256], index: 6, kind: output, shape index: {}]  }
   0x1 LB: > { %s2819_s22 = sadd.s32 4294967295, %s3089_s21   ;;  %p2823_p0 = scmp.ge.s32.totalorder %s3089_s21, 1  ;;  %s3089_s21 = sphi %s3136_s21, %s16_s21  }
   0x2   : > { %p212_p1 = scmp.lt.s32.totalorder %s3089_s21, 3 }
   0x4   : > { %p213_p2 = pnand %p2823_p0, %p212_p1 }
   0x5   : > { %v2828_v0 = vld.sshfl [vmem:[%s4198_s5] sm:$0x11 pattern:$0x75316420] (!%p213_p2)  ;;  %v318_v1 = vlaneseq (!%p213_p2)  ;;  %v3091_v2 = vmov (!%p213_p2), 1966171168  }
   0x6   : > { %216 = sbr.rel (%p213_p2) target bundleno = 1236 (0x4d4), region = 44  ;;  %v316_v3 = vunpack.c.l.s4 (!%p213_p2), %v3091_v2  ;;  %p242_p3 = scmp.lt.s32.totalorder (!%p213_p2), %s2819_s22, 1  ;;  %v3092_v5 = vmov (!%p213_p2), 0   ;;  %v314_v7 = vcombine.high (!%p213_p2), %v2828_v0, %v2828_v0  ;;  %vm349_vm0 = vcmask (!%p213_p2), 908288  }
   0x7   : > { %v319_v4 = vshrl.u32 (!%p213_p2), %v318_v1, 7  ;;  %3011 = vset.pattern.permute.xlu0 (!%p213_p2), %v3092_v5  ;;  %3010 = vset.pattern.permute.xlu1 (!%p213_p2), %v3092_v5  ;;  %s3093_s29 = smov (!%p213_p2), 16   ;;  %s3094_s30 = smov (!%p213_p2), 111   ;;  %vm626_vm1 = vcmask (!%p213_p2), 1039360   ;;  %vm532_vm2 = vcmask (!%p213_p2), 924672   ;;  %vm679_vm3 = vcmask (!%p213_p2), 7168  }
   0x8   : > { %v317_v6 = vunpack.c.0.s8 (!%p213_p2), %v316_v3  ;;  %s3095_s7 = smov (!%p213_p2), 127   ;;  %s3096_s8 = smov (!%p213_p2), 113   ;;  %vm585_vm4 = vcmask (!%p213_p2), 121856   ;;  %vm402_vm5 = vcmask (!%p213_p2), 138240   ;;  %vm475_vm6 = vcmask (!%p213_p2), 130048  }
   0x9   : > { %v334_v10 = vsub.s32 (!%p213_p2), 0, %v319_v4  ;;  %s3097_s9 = smov (!%p213_p2), 1   ;;  %s3098_s10 = smov (!%p213_p2), 15   ;;  %vm952_vm7 = vcmask (!%p213_p2), 916480   ;;  %vm1313_vm8 = vcmask (!%p213_p2), 523264  }
   0xa   : > { %v320_v8 = vsub.s32 (!%p213_p2), %v317_v6, %v319_v4  ;;  %s3099_s11 = smov (!%p213_p2), 17   ;;  %s3100_s14 = smov (!%p213_p2), 112  }
   0xc   : > { %v321_v9 = vrot.slane (!%p213_p2), %v2828_v0, %v320_v8  ;;  %v328_v11 = vrot.slane (!%p213_p2), %v314_v7, %v320_v8 }
   0xd   : > { %s4201_s22 = smov (!%p242_p3, %s2819_s22), 1 }
   0xe   : > { %s2879_s25 = sshll.u32 %s4201_s22, 7  ;;  %v330_v14 = vpack.i.b16 %v321_v9, %v321_v9  ;;  %v337_v15 = vpack.i.b16 %v328_v11, %v328_v11  ;;  %v512_v17 = vshrl.u32 %v321_v9, 16  ;;  %v519_v20 = vshrl.u32 %v328_v11, 16 }
   0xf   : > { %s3157_s28 = scalar_lea.vmem %s4193_s0, %s2879_s25  ;;  %s4160_s19 = scalar_lea.vmem %s4199_s6, %s2879_s25 }
  0x10   : > { %v263_v12 = vld [vmem:[%s3157_s28 + $0x8] sm:$0xff]  ;;  %v265_v13 = vld [vmem:[%s3157_s28 + $0x18] sm:$0xff]  ;;  %v335_v18 = vrot.slane %v330_v14, %v334_v10  ;;  %v513_v19 = vpack.i.b16 %v512_v17, %v512_v17  ;;  %v262_v21 = vld [vmem:[%s3157_s28] sm:$0xff]  ;;  %v342_v23 = vrot.slane %v337_v15, %v334_v10  ;;  %v520_v25 = vpack.i.b16 %v519_v20, %v519_v20 }
  0x11   : > { %v3161_v16 = vpack.c.bf16 %v265_v13, %v263_v12  ;;  %v264_v22 = vld [vmem:[%s3157_s28 + $0x10] sm:$0xff]  ;;  %v266_v28 = vld [vmem:[%s3157_s28 + $0x20] sm:$0xff]  ;;  %v267_v33 = vld [vmem:[%s3157_s28 + $0x28] sm:$0xff] }
  0x12   : > { %345 = vrot.lane.b32.xlu0 %v335_v18, %s3094_s30  ;;  %v3169_v24 = vrot.slane %v513_v19, %v334_v10  ;;  %v3172_v26 = vpack.c.bf16 %v264_v22, %v262_v21  ;;  %v3176_v27 = vrot.slane %v520_v25, %v334_v10  ;;  %v268_v29 = vld [vmem:[%s3157_s28 + $0x30] sm:$0xff]  ;;  %v270_v31 = vld [vmem:[%s3157_s28 + $0x40] sm:$0xff]  ;;  %v269_v34 = vld [vmem:[%s3157_s28 + $0x38] sm:$0xff] }
  0x13   : > { %455 = vrot.lane.b32.xlu1 %v3161_v16, %s3093_s29  ;;  %v3187_v30 = vpack.c.bf16 %v268_v29, %v266_v28  ;;  %v272_v32 = vld [vmem:[%s3157_s28 + $0x50] sm:$0xff]  ;;  %v3201_v36 = vpack.c.bf16 %v269_v34, %v267_v33  ;;  %v271_v37 = vld [vmem:[%s3157_s28 + $0x48] sm:$0xff]  ;;  %v273_v38 = vld [vmem:[%s3157_s28 + $0x58] sm:$0xff] }
  0x14   : > { %v3197_v35 = vpack.c.bf16 %v272_v32, %v270_v31  ;;  %v275_v39 = vld [vmem:[%s3157_s28 + $0x68] sm:$0xff]  ;;  %v277_v40 = vld [vmem:[%s3157_s28 + $0x78] sm:$0xff]  ;;  %v3211_v41 = vpack.c.bf16 %v273_v38, %v271_v37  ;;  %v274_v42 = vld [vmem:[%s3157_s28 + $0x60] sm:$0xff] }
  0x15   : > { %v276_v43 = vld [vmem:[%s3157_s28 + $0x70] sm:$0xff]  ;;  %v3217_v44 = vpack.c.bf16 %v277_v40, %v275_v39  ;;  %v3029_v31 = vld [vmem:[%s4194_s1 + $0x4] ss:$20 sps:$4 sm:$0xff]  }
  0x16   : > { %347 = vrot.lane.b32.xlu0 %v342_v23, %s3094_s30  ;;  %v3221_v45 = vpack.c.bf16 %v276_v43, %v274_v42  ;;  %1358 = vmatprep.mubr.bf16.mxu0 %v3029_v31 }
  0x17   : > { %624 = vrot.lane.b32.xlu1 %v342_v23, %s3095_s7 }
  0x1a   : > { %453 = vrot.lane.b32.xlu0 %v3172_v26, %s3093_s29 }
  0x1b   : > { %528 = vrot.lane.b32.xlu1 %v3169_v24, %s3096_s8 }
  0x1e   : > { %622 = vrot.lane.b32.xlu0 %v335_v18, %s3095_s7 }
  0x1f   : > { %530 = vrot.lane.b32.xlu1 %v3176_v27, %s3096_s8 }
  0x22   : > { %2996 = vrot.lane.b32.xlu0 %v3092_v5, %s3093_s29 }
  0x23   : > { %732 = vrot.lane.b32.xlu1 %v3169_v24, %s3097_s9 }
  0x26   : > { %734 = vrot.lane.b32.xlu0 %v3176_v27, %s3097_s9 }
  0x27   : > { %459 = vrot.lane.b32.xlu1 %v3187_v30, %s3093_s29 }
  0x2a   : > { %461 = vrot.lane.b32.xlu0 %v3201_v36, %s3093_s29 }
  0x2b   : > { %465 = vrot.lane.b32.xlu1 %v3197_v35, %s3093_s29 }
  0x2e   : > { %467 = vrot.lane.b32.xlu0 %v3211_v41, %s3093_s29 }
  0x2f   : > { %3001 = vrot.lane.b32.xlu1 %v3092_v5, %s3093_s29 }
  0x32   : > { %471 = vrot.lane.b32.xlu0 %v3221_v45, %s3093_s29 }
  0x33   : > { %473 = vrot.lane.b32.xlu1 %v3217_v44, %s3093_s29 }
  0x36   : > { %826 = vrot.lane.b32.xlu0 %v342_v23, %s3098_s10 }
  0x37   : > { %824 = vrot.lane.b32.xlu1 %v335_v18, %s3098_s10 }
  0x84   : > { %v346_v46 = vpop.permute.xlu0 %345 }
  0x85   : > { %v3229_v47 = vmul.bf16 0, %v346_v46  ;;  %v3241_v51 = vpop.permute.xlu1 %455 }
  0x87   : > { %378 = vrot.lane.b32.xlu0 %v3229_v47, %s3099_s11 }
  0x88   : > { %v3233_v48 = vpop.permute.xlu0 %347 }
  0x89   : > { %v356_v49 = vmul.bf16 %v3233_v48, %v3161_v16  ;;  %v359_v50 = vmul.bf16 %v3233_v48, %v3201_v36  ;;  %v362_v53 = vmul.bf16 %v3233_v48, %v3211_v41  ;;  %v365_v54 = vmul.bf16 %v3233_v48, %v3217_v44  ;;  %v3259_v56 = vpop.permute.xlu1 %624 }
  0x8a   : > { %v3255_v55 = vsel %vm349_vm0, %v346_v46, %v3233_v48  ;;  %v633_v60 = vmul.bf16 %v3259_v56, %v3161_v16  ;;  %v636_v13 = vmul.bf16 %v3259_v56, %v3201_v36  ;;  %v639_v17 = vmul.bf16 %v3259_v56, %v3211_v41 }
  0x8b   : > { %382 = vrot.lane.b32.xlu1 %v356_v49, %s3099_s11  ;;  %388 = vrot.lane.b32.xlu0 %v359_v50, %s3099_s11  ;;  %v355_v57 = vmul.bf16 %v3255_v55, %v3172_v26  ;;  %v358_v61 = vmul.bf16 %v3255_v55, %v3187_v30  ;;  %v361_v62 = vmul.bf16 %v3255_v55, %v3197_v35 }
  0x8c   : > { %v3247_v52 = vpop.permute.xlu0 %453  ;;  %v364_v1 = vmul.bf16 %v3255_v55, %v3221_v45  ;;  %v642_v23 = vmul.bf16 %v3259_v56, %v3217_v44 }
  0x8d   : > { %v529_v0 = vpop.permute.xlu1 %528 }
  0x8e   : > { %v3287_v3 = vmul.bf16 0, %v529_v0 }
  0x8f   : > { %384 = vrot.lane.b32.xlu1 %v3229_v47, %s3099_s11  ;;  %390 = vrot.lane.b32.xlu0 %v3229_v47, %s3099_s11 }
  0x90   : > { %v623_v58 = vpop.permute.xlu0 %622 }
  0x91   : > { %v3263_v59 = vmul.bf16 0, %v623_v58  ;;  %v3279_v63 = vsel %vm626_vm1, %v623_v58, %v3259_v56  ;;  %v3293_v6 = vpop.permute.xlu1 %530 }
  0x92   : > { %v632_v2 = vmul.bf16 %v3279_v63, %v3172_v26  ;;  %v635_v4 = vmul.bf16 %v3279_v63, %v3187_v30  ;;  %v539_v7 = vmul.bf16 %v3293_v6, %v3161_v16  ;;  %v542_v8 = vmul.bf16 %v3293_v6, %v3201_v36 }
  0x93   : > { %394 = vrot.lane.b32.xlu1 %v362_v53, %s3099_s11  ;;  %400 = vrot.lane.b32.xlu0 %v365_v54, %s3099_s11  ;;  %v545_v9 = vmul.bf16 %v3293_v6, %v3211_v41  ;;  %v548_v10 = vmul.bf16 %v3293_v6, %v3217_v44  ;;  %v3314_v11 = vsel %vm532_vm2, %v529_v0, %v3293_v6 }
  0x94   : > { %v538_v12 = vmul.bf16 %v3314_v11, %v3172_v26  ;;  %v541_v14 = vmul.bf16 %v3314_v11, %v3187_v30  ;;  %v544_v15 = vmul.bf16 %v3314_v11, %v3197_v35  ;;  %v638_v18 = vmul.bf16 %v3279_v63, %v3197_v35  ;;  %v3344_v21 = vpop.permute.xlu0 %2996 }
  0x95   : > { %v547_v19 = vmul.bf16 %v3314_v11, %v3221_v45  ;;  %v3342_v20 = vpop.permute.xlu1 %732  ;;  %v641_v22 = vmul.bf16 %v3279_v63, %v3221_v45 }
  0x96   : > { %v740_v28 = vmul.bf16 %v3342_v20, %v3172_v26  ;;  %v743_v39 = vmul.bf16 %v3342_v20, %v3187_v30  ;;  %v746_v40 = vmul.bf16 %v3342_v20, %v3197_v35 }
  0x97   : > { %396 = vrot.lane.b32.xlu1 %v3229_v47, %s3099_s11  ;;  %380 = vrot.lane.b32.xlu0 %v355_v57, %s3099_s11 }
  0x98   : > { %v735_v29 = vpop.permute.xlu0 %734 }
  0x99   : > { %v3355_v25 = vpop.permute.xlu1 %459  ;;  %v3365_v32 = vmul.bf16 0, %v735_v29 }
  0x9b   : > { %659 = vrot.lane.b32.xlu1 %v633_v60, %s3097_s9  ;;  %655 = vrot.lane.b32.xlu0 %v3263_v59, %s3097_s9  ;;  %v749_v60 = vmul.bf16 %v3342_v20, %v3221_v45 }
  0x9c   : > { %v3369_v34 = vpop.permute.xlu0 %461 }
  0x9d   : > { %v3367_v33 = vpop.permute.xlu1 %465 }
  0x9f   : > { %386 = vrot.lane.b32.xlu1 %v358_v61, %s3099_s11  ;;  %392 = vrot.lane.b32.xlu0 %v361_v62, %s3099_s11 }
  0xa0   : > { %v3377_v38 = vpop.permute.xlu0 %467 }
  0xa1   : > { %v3375_v37 = vpop.permute.xlu1 %3001 }
  0xa3   : > { %398 = vrot.lane.b32.xlu1 %v364_v1, %s3099_s11  ;;  %657 = vrot.lane.b32.xlu0 %v632_v2, %s3097_s9 }
  0xa5   : > { %v3393_v42 = vpop.permute.xlu1 %473 }
  0xa7   : > { %663 = vrot.lane.b32.xlu1 %v635_v4, %s3097_s9  ;;  %561 = vrot.lane.b32.xlu0 %v3287_v3, %s3098_s10 }
  0xa9   : > { %v3406_v50 = vpop.permute.xlu1 %824 }
  0xaa   : > { %v832_v62 = vmul.bf16 %v3406_v50, %v3172_v26  ;;  %v835_v1 = vmul.bf16 %v3406_v50, %v3187_v30  ;;  %v838_v4 = vmul.bf16 %v3406_v50, %v3197_v35 }
  0xab   : > { %565 = vrot.lane.b32.xlu1 %v539_v7, %s3098_s10  ;;  %571 = vrot.lane.b32.xlu0 %v542_v8, %s3098_s10 }
  0xaf   : > { %567 = vrot.lane.b32.xlu1 %v3287_v3, %s3098_s10  ;;  %573 = vrot.lane.b32.xlu0 %v3287_v3, %s3098_s10 }
  0xb3   : > { %577 = vrot.lane.b32.xlu1 %v545_v9, %s3098_s10  ;;  %583 = vrot.lane.b32.xlu0 %v548_v10, %s3098_s10 }
  0xb7   : > { %579 = vrot.lane.b32.xlu1 %v3287_v3, %s3098_s10  ;;  %563 = vrot.lane.b32.xlu0 %v538_v12, %s3098_s10 }
  0xbb   : > { %661 = vrot.lane.b32.xlu1 %v3263_v59, %s3097_s9  ;;  %665 = vrot.lane.b32.xlu0 %v636_v13, %s3097_s9 }
  0xbf   : > { %569 = vrot.lane.b32.xlu1 %v541_v14, %s3098_s10  ;;  %575 = vrot.lane.b32.xlu0 %v544_v15, %s3098_s10  ;;  %v841_v14 = vmul.bf16 %v3406_v50, %v3221_v45 }
  0xc3   : > { %671 = vrot.lane.b32.xlu1 %v639_v17, %s3097_s9  ;;  %669 = vrot.lane.b32.xlu0 %v638_v18, %s3097_s9 }
  0xc7   : > { %581 = vrot.lane.b32.xlu1 %v547_v19, %s3098_s10  ;;  %667 = vrot.lane.b32.xlu0 %v3263_v59, %s3097_s9 }
  0xcb   : > { %675 = vrot.lane.b32.xlu1 %v641_v22, %s3097_s9  ;;  %677 = vrot.lane.b32.xlu0 %v642_v23, %s3097_s9 }
  0xcf   : > { %673 = vrot.lane.b32.xlu1 %v3263_v59, %s3097_s9  ;;  %764 = vrot.lane.b32.xlu0 %v740_v28, %s3095_s7 }
  0xd3   : > { %768 = vrot.lane.b32.xlu1 %v3365_v32, %s3095_s7  ;;  %991 = vrot.lane.b32.xlu0 %v3176_v27, %s3099_s11  ;;  %v3389_v27 = vsel %vm679_vm3, %v3342_v20, %v735_v29 }
  0xd4   : > { %v741_v43 = vmul.bf16 %v3389_v27, %v3161_v16  ;;  %v744_v46 = vmul.bf16 %v3389_v27, %v3201_v36  ;;  %v747_v49 = vmul.bf16 %v3389_v27, %v3211_v41  ;;  %v750_v57 = vmul.bf16 %v3389_v27, %v3217_v44 }
  0xd7   : > { %989 = vrot.lane.b32.xlu1 %v3169_v24, %s3099_s11  ;;  %774 = vrot.lane.b32.xlu0 %v3365_v32, %s3095_s7  ;;  %v3395_v24 = vpop.permute.xlu0 %471 }
  0xdb   : > { %770 = vrot.lane.b32.xlu1 %v743_v39, %s3095_s7  ;;  %776 = vrot.lane.b32.xlu0 %v746_v40, %s3095_s7  ;;  %v827_v53 = vpop.permute.xlu0 %826 }
  0xdc   : > { %v3412_v54 = vsel %vm585_vm4, %v3406_v50, %v827_v53  ;;  %v3423_v61 = vmul.bf16 0, %v827_v53 }
  0xdd   : > { %v833_v58 = vmul.bf16 %v3412_v54, %v3161_v16  ;;  %v836_v0 = vmul.bf16 %v3412_v54, %v3201_v36  ;;  %v839_v2 = vmul.bf16 %v3412_v54, %v3211_v41  ;;  %v842_v10 = vmul.bf16 %v3412_v54, %v3217_v44 }
  0xdf   : > { %780 = vrot.lane.b32.xlu1 %v3365_v32, %s3095_s7  ;;  %766 = vrot.lane.b32.xlu0 %v741_v43, %s3095_s7 }
  0xe3   : > { %772 = vrot.lane.b32.xlu1 %v744_v46, %s3095_s7  ;;  %778 = vrot.lane.b32.xlu0 %v747_v49, %s3095_s7 }
  0xe7   : > { %784 = vrot.lane.b32.xlu1 %v750_v57, %s3095_s7  ;;  %786 = vrot.lane.b32.xlu0 %v3365_v32, %s3095_s7 }
  0xeb   : > { %782 = vrot.lane.b32.xlu1 %v749_v60, %s3095_s7  ;;  %858 = vrot.lane.b32.xlu0 %v833_v58, %s3096_s8 }
  0xef   : > { %860 = vrot.lane.b32.xlu1 %v3423_v61, %s3096_s8  ;;  %856 = vrot.lane.b32.xlu0 %v832_v62, %s3096_s8 }
  0xf3   : > { %864 = vrot.lane.b32.xlu1 %v836_v0, %s3096_s8  ;;  %866 = vrot.lane.b32.xlu0 %v3423_v61, %s3096_s8  ;;  %v2998_v0 = vunpack.i.l.bf16 %v3344_v21 }
  0xf7   : > { %862 = vrot.lane.b32.xlu1 %v835_v1, %s3096_s8  ;;  %870 = vrot.lane.b32.xlu0 %v839_v2, %s3096_s8  ;;  %v477_v2 = vsel %vm475_vm6, %v3247_v52, %v3241_v51 }
  0xf9   : > { %v379_v7 = vpop.permute.xlu0 %378 }
  0xfb   : > { %872 = vrot.lane.b32.xlu1 %v3423_v61, %s3096_s8  ;;  %868 = vrot.lane.b32.xlu0 %v838_v4, %s3096_s8 }
  0xfd   : > { %v383_v8 = vpop.permute.xlu1 %382  ;;  %v389_v9 = vpop.permute.xlu0 %388 }
  0xff   : > { %876 = vrot.lane.b32.xlu1 %v842_v10, %s3096_s8  ;;  %878 = vrot.lane.b32.xlu0 %v3423_v61, %s3096_s8  ;;  %v479_v10 = vsel %vm475_vm6, %v3355_v25, %v3369_v34 }
 0x101   : > { %v385_v12 = vpop.permute.xlu1 %384  ;;  %v391_v13 = vpop.permute.xlu0 %390 }
 0x103   : > { %874 = vrot.lane.b32.xlu1 %v841_v14, %s3096_s8  ;;  %930 = vrot.lane.b32.xlu0 %v3161_v16, %s3100_s14  ;;  %v3003_v14 = vunpack.i.l.bf16 %v3375_v37 }
 0x105   : > { %v395_v15 = vpop.permute.xlu1 %394  ;;  %v401_v17 = vpop.permute.xlu0 %400  ;;  %v480_v34 = vsel %vm475_vm6, %v3003_v14, %v3367_v33 }
 0x107   : > { %3006 = vrot.lane.b32.xlu1 %v3092_v5, %s3100_s14  ;;  %928 = vrot.lane.b32.xlu0 %v3172_v26, %s3100_s14 }
 0x109   : > { %v397_v18 = vpop.permute.xlu1 %396  ;;  %v381_v19 = vpop.permute.xlu0 %380 }
 0x10a   : > { %v404_v22 = vsel %vm402_vm5, %v381_v19, %v383_v8  ;;  %v403_v23 = vsel %vm402_vm5, %v379_v7, %v381_v19  ;;  %v2999_v8 = vunpack.i.h.bf16 %v3344_v21  ;;  %v481_v21 = vsel %vm475_vm6, %v3367_v33, %v3377_v38 }
 0x10b   : > { %1326 = vmatprep.subr.bf16.mxu0 %v404_v22  ;;  %936 = vrot.lane.b32.xlu1 %v3201_v36, %s3100_s14 }
 0x10c   : > { %1327 = vmatpush1.bf16.msra.mxu0 %v403_v23  ;;  %934 = vrot.lane.b32.xlu0 %v3187_v30, %s3100_s14  ;;  %v478_v51 = vsel %vm475_vm6, %v2999_v8, %v3355_v25 }
 0x10d   : > { %v3468_v28 = vpop.permute.xlu1 %659  ;;  %v3470_v29 = vpop.permute.xlu0 %655 }
 0x10f   : > { %942 = vrot.lane.b32.xlu1 %v3211_v41, %s3100_s14 }
 0x110   : > { %944 = vrot.lane.b32.xlu0 %v3092_v5, %s3100_s14 }
 0x111   : > { %v387_v31 = vpop.permute.xlu1 %386  ;;  %v393_v39 = vpop.permute.xlu0 %392 }
 0x112   : > { %v406_v40 = vsel %vm402_vm5, %v387_v31, %v389_v9  ;;  %v405_v43 = vsel %vm402_vm5, %v385_v12, %v387_v31  ;;  %v408_v46 = vsel %vm402_vm5, %v393_v39, %v395_v15  ;;  %v407_v57 = vsel %vm402_vm5, %v391_v13, %v393_v39 }
 0x113   : > { %1328 = vmatprep.subr.bf16.mxu0 %v406_v40  ;;  %940 = vrot.lane.b32.xlu1 %v3197_v35, %s3100_s14  ;;  %v476_v9 = vsel %vm475_vm6, %v2998_v0, %v3247_v52 }
 0x114   : > { %1329 = vmatpush1.bf16.msra.mxu0 %v405_v43  ;;  %948 = vrot.lane.b32.xlu0 %v3217_v44, %s3100_s14 }
 0x115   : > { %v399_v49 = vpop.permute.xlu1 %398  ;;  %1330 = vmatprep.subr.bf16.mxu0 %v408_v46  ;;  %v3483_v53 = vpop.permute.xlu0 %657 }
 0x116   : > { %v410_v58 = vsel %vm402_vm5, %v399_v49, %v401_v17  ;;  %v409_v1 = vsel %vm402_vm5, %v397_v18, %v399_v49  ;;  %v3004_v17 = vunpack.i.h.bf16 %v3375_v37  ;;  %v483_v18 = vsel %vm475_vm6, %v3395_v24, %v3393_v42 }
 0x117   : > { %950 = vrot.lane.b32.xlu1 %v3092_v5, %s3100_s14 }
 0x118   : > { %1331 = vmatpush1.bf16.msra.mxu0 %v407_v57  ;;  %946 = vrot.lane.b32.xlu0 %v3221_v45, %s3100_s14  ;;  %v482_v22 = vsel %vm475_vm6, %v3004_v17, %v3395_v24 }
 0x119   : > { %v3491_v60 = vpop.permute.xlu1 %663  ;;  %1332 = vmatprep.subr.bf16.mxu0 %v410_v58  ;;  %v562_v62 = vpop.permute.xlu0 %561 }
 0x11c   : > { %1333 = vmatpush1.bf16.msra.mxu0 %v409_v1  ;;  %v681_v1 = vsel %vm679_vm3, %v3483_v53, %v3468_v28 }
 0x11d   : > { %v566_v4 = vpop.permute.xlu1 %565  ;;  %1334 = vmatprep.subr.bf16.mxu0 %v477_v2  ;;  %v572_v7 = vpop.permute.xlu0 %571 }
 0x120   : > { %1335 = vmatpush1.bf16.msra.mxu0 %v476_v9 }
 0x121   : > { %v568_v12 = vpop.permute.xlu1 %567  ;;  %1336 = vmatprep.subr.bf16.mxu0 %v479_v10  ;;  %v574_v13 = vpop.permute.xlu0 %573 }
 0x124   : > { %1337 = vmatpush1.bf16.msra.mxu0 %v478_v51 }
 0x125   : > { %v578_v15 = vpop.permute.xlu1 %577  ;;  %1338 = vmatprep.subr.bf16.mxu0 %v481_v21  ;;  %v584_v52 = vpop.permute.xlu0 %583 }
 0x128   : > { %1339 = vmatpush1.bf16.msra.mxu0 %v480_v34 }
 0x129   : > { %v580_v19 = vpop.permute.xlu1 %579  ;;  %1340 = vmatprep.subr.bf16.mxu0 %v483_v18  ;;  %v564_v25 = vpop.permute.xlu0 %563  ;;  %v3027_v18 = vld [vmem:[%s4194_s1] ss:$20 sps:$4 sm:$0xff]  }
 0x12a   : > { %v587_v38 = vsel %vm585_vm4, %v564_v25, %v566_v4  ;;  %v586_v31 = vsel %vm585_vm4, %v562_v62, %v564_v25 }
 0x12c   : > { %1341 = vmatpush1.bf16.msra.mxu0 %v482_v22 }
 0x12d   : > { %v662_v23 = vpop.permute.xlu1 %661  ;;  %1342 = vmatprep.subr.bf16.mxu0 %v587_v38  ;;  %v666_v37 = vpop.permute.xlu0 %665 }
 0x12e   : > { %v683_v8 = vsel %vm679_vm3, %v3491_v60, %v666_v37 }
 0x130   : > { %1343 = vmatpush1.bf16.msra.mxu0 %v586_v31 }
 0x131   : > { %v570_v33 = vpop.permute.xlu1 %569  ;;  %v576_v39 = vpop.permute.xlu0 %575 }
 0x132   : > { %v589_v40 = vsel %vm585_vm4, %v570_v33, %v572_v7  ;;  %v588_v42 = vsel %vm585_vm4, %v568_v12, %v570_v33  ;;  %v591_v43 = vsel %vm585_vm4, %v576_v39, %v578_v15  ;;  %v590_v49 = vsel %vm585_vm4, %v574_v13, %v576_v39  ;;  %v3033_v33 = vld [vmem:[%s4194_s1 + $0x54] ss:$20 sps:$4 sm:$0xff]  }
 0x133   : > { %1344 = vmatprep.subr.bf16.mxu0 %v589_v40  ;;  %v680_v7 = vsel %vm679_vm3, %v3470_v29, %v3483_v53  ;;  %v682_v12 = vsel %vm679_vm3, %v662_v23, %v3491_v60 }
 0x134   : > { %1345 = vmatpush1.bf16.msra.mxu0 %v588_v42 }
 0x135   : > { %v672_v24 = vpop.permute.xlu1 %671  ;;  %1346 = vmatprep.subr.bf16.mxu0 %v591_v43  ;;  %v670_v46 = vpop.permute.xlu0 %669 }
 0x136   : > { %v685_v28 = vsel %vm679_vm3, %v670_v46, %v672_v24 }
 0x138   : > { %1347 = vmatpush1.bf16.msra.mxu0 %v590_v49 }
 0x139   : > { %v582_v57 = vpop.permute.xlu1 %581  ;;  %v668_v58 = vpop.permute.xlu0 %667 }
 0x13a   : > { %v593_v62 = vsel %vm585_vm4, %v582_v57, %v584_v52  ;;  %v592_v0 = vsel %vm585_vm4, %v580_v19, %v582_v57  ;;  %v684_v29 = vsel %vm679_vm3, %v668_v58, %v670_v46  ;;  %v3030_v19 = vld [vmem:[%s4194_s1 + $0x2c] ss:$20 sps:$4 sm:$0xff]   ;;  %v3036_v46 = vld [vmem:[%s4194_s1 + $0x7c] ss:$20 sps:$4 sm:$0xff]  }
 0x13b   : > { %1348 = vmatprep.subr.bf16.mxu0 %v593_v62 }
 0x13c   : > { %1349 = vmatpush1.bf16.msra.mxu0 %v592_v0 }
 0x13d   : > { %v676_v2 = vpop.permute.xlu1 %675  ;;  %1350 = vmatprep.subr.bf16.mxu0 %v681_v1  ;;  %v678_v4 = vpop.permute.xlu0 %677  ;;  %v1169_v1 = vld [vmem:[%s4195_s2 + $0x20] sm:$0xff] }
 0x13e   : > { %v687_v53 = vsel %vm679_vm3, %v676_v2, %v678_v4 }
 0x140   : > { %1351 = vmatpush1.bf16.msra.mxu0 %v680_v7  ;;  %v3038_v7 = vld [vmem:[%s4194_s1 + $0x78] ss:$20 sps:$4 sm:$0xff]  }
 0x141   : > { %v674_v9 = vpop.permute.xlu1 %673  ;;  %1352 = vmatprep.subr.bf16.mxu0 %v683_v8  ;;  %v3534_v10 = vpop.permute.xlu0 %764  ;;  %v3041_v8 = vld [vmem:[%s4194_s1 + $0xc] ss:$20 sps:$4 sm:$0xff]  }
 0x142   : > { %v686_v52 = vsel %vm679_vm3, %v674_v9, %v676_v2  ;;  %v1165_v2 = vld [vmem:[%s4195_s2] sm:$0xff] }
 0x144   : > { %1353 = vmatpush1.bf16.msra.mxu0 %v682_v12 }
 0x145   : > { %v769_v13 = vpop.permute.xlu1 %768  ;;  %1354 = vmatprep.subr.bf16.mxu0 %v685_v28  ;;  %v992_v14 = vpop.permute.xlu0 %991  ;;  %v1171_v28 = vld [vmem:[%s4195_s2 + $0x30] sm:$0xff] }
 0x146   : > { %v3539_v51 = vmul.bf16 0, %v992_v14 }
 0x148   : > { %1355 = vmatpush1.bf16.msra.mxu0 %v684_v29  ;;  %1025 = vrot.lane.b32.xlu0 %v3539_v51, %s3094_s30 }
 0x149   : > { %v3545_v21 = vpop.permute.xlu1 %989  ;;  %1356 = vmatprep.subr.bf16.mxu0 %v687_v53  ;;  %v775_v60 = vpop.permute.xlu0 %774 }
 0x14a   : > { %v3549_v15 = vsel %vm402_vm5, %v3545_v21, %v992_v14  ;;  %v1000_v38 = vmul.bf16 %v3545_v21, %v3187_v30  ;;  %v997_v23 = vmul.bf16 %v3545_v21, %v3172_v26  ;;  %v1006_v43 = vmul.bf16 %v3545_v21, %v3221_v45 }
 0x14b   : > { %v1001_v17 = vmul.bf16 %v3549_v15, %v3201_v36  ;;  %v998_v34 = vmul.bf16 %v3549_v15, %v3161_v16  ;;  %v1003_v24 = vmul.bf16 %v3545_v21, %v3197_v35 }
 0x14c   : > { %1357 = vmatpush1.bf16.msra.mxu0 %v686_v52  ;;  %v1168_v52 = vld [vmem:[%s4195_s2 + $0x18] sm:$0xff] }
 0x14d   : > { %v771_v25 = vpop.permute.xlu1 %770  ;;  %1029 = vrot.lane.b32.xlu0 %v1001_v17, %s3094_s30  ;;  %1023 = vrot.lane.b32.xlu1 %v998_v34, %s3094_s30  ;;  %v3564_v22 = vpop.permute.xlu0 %776 }
 0x14e   : > { %1399 = vmatprep.subr.bf16.mxu0 %v3161_v16  ;;  %v3032_v16 = vld [vmem:[%s4194_s1 + $0x28] ss:$20 sps:$4 sm:$0xff]  }
 0x14f   : > { %1359 = vmatmul.mubr.bf16.vlgmr.msra.gmra.mrb[0].mxu0 %v3027_v18 }
 0x150   : > { %1400 = vmatpush1.bf16.msra.mxu0 %v3172_v26  ;;  %1368 = vmatprep.mubr.bf16.mxu0 %v3030_v19 }
 0x151   : > { %v781_v37 = vpop.permute.xlu1 %780  ;;  %1027 = vrot.lane.b32.xlu0 %v1000_v38, %s3094_s30  ;;  %1021 = vrot.lane.b32.xlu1 %v997_v23, %s3094_s30  ;;  %v767_v31 = vpop.permute.xlu0 %766 }
 0x152   : > { %1401 = vmatprep.subr.bf16.mxu0 %v3201_v36  ;;  %v1007_v36 = vmul.bf16 %v3549_v15, %v3217_v44 }
 0x154   : > { %1402 = vmatpush1.bf16.msra.mxu0 %v3187_v30  ;;  %v1004_v30 = vmul.bf16 %v3549_v15, %v3211_v41 }
 0x155   : > { %v773_v26 = vpop.permute.xlu1 %772  ;;  %1037 = vrot.lane.b32.xlu0 %v3539_v51, %s3094_s30  ;;  %1031 = vrot.lane.b32.xlu1 %v3539_v51, %s3094_s30  ;;  %v779_v39 = vpop.permute.xlu0 %778 }
 0x156   : > { %1403 = vmatprep.subr.bf16.mxu0 %v3211_v41  ;;  %v3035_v41 = vld [vmem:[%s4194_s1 + $0x50] ss:$20 sps:$4 sm:$0xff]   ;;  %v791_v62 = vsel %vm626_vm1, %v773_v26, %v775_v60  ;;  %v790_v4 = vsel %vm626_vm1, %v771_v25, %v773_v26  ;;  %v792_v14 = vsel %vm626_vm1, %v3564_v22, %v779_v39  ;;  %v1170_v22 = vld [vmem:[%s4195_s2 + $0x28] sm:$0xff] }
 0x157   : > { %1369 = vmatmul.mubr.bf16.gmra.mrb[4].mxu0 %v3032_v16 }
 0x158   : > { %1404 = vmatpush1.bf16.msra.mxu0 %v3197_v35  ;;  %1378 = vmatprep.mubr.bf16.mxu0 %v3033_v33  ;;  %v1166_v35 = vld [vmem:[%s4195_s2 + $0x8] sm:$0xff] }
 0x159   : > { %v785_v40 = vpop.permute.xlu1 %784  ;;  %1041 = vrot.lane.b32.xlu0 %v1007_v36, %s3094_s30  ;;  %1035 = vrot.lane.b32.xlu1 %v1004_v30, %s3094_s30  ;;  %v787_v42 = vpop.permute.xlu0 %786 }
 0x15a   : > { %1405 = vmatprep.subr.bf16.mxu0 %v3217_v44  ;;  %v789_v44 = vsel %vm626_vm1, %v767_v31, %v769_v13  ;;  %v1167_v13 = vld [vmem:[%s4195_s2 + $0x10] sm:$0xff]  ;;  %v795_v53 = vsel %vm626_vm1, %v785_v40, %v787_v42 }
 0x15c   : > { %1406 = vmatpush1.bf16.msra.mxu0 %v3221_v45  ;;  %v788_v45 = vsel %vm626_vm1, %v3534_v10, %v767_v31  ;;  %v793_v10 = vsel %vm626_vm1, %v779_v39, %v781_v37  ;;  %v1172_v31 = vld [vmem:[%s4195_s2 + $0x38] sm:$0xff] }
 0x15d   : > { %v783_v49 = vpop.permute.xlu1 %782  ;;  %1039 = vrot.lane.b32.xlu0 %v1006_v43, %s3094_s30  ;;  %1033 = vrot.lane.b32.xlu1 %v1003_v24, %s3094_s30  ;;  %v859_v57 = vpop.permute.xlu0 %858 }
 0x15e   : > { %1407 = vmatprep.subr.bf16.mxu0 %v789_v44  ;;  %v794_v17 = vsel %vm626_vm1, %v783_v49, %v785_v40 }
 0x15f   : > { %1379 = vmatmul.mubr.bf16.gmra.mrb[8].mxu0 %v3035_v41 }
 0x160   : > { %1408 = vmatpush1.bf16.msra.mxu0 %v788_v45  ;;  %1388 = vmatprep.mubr.bf16.mxu0 %v3036_v46 }
 0x161   : > { %v861_v58 = vpop.permute.xlu1 %860  ;;  %1180 = vperm.xlu0 %3011, %v1166_v35   ;;  %1043 = vrot.lane.b32.xlu1 %v3539_v51, %s3094_s30  ;;  %v857_v0 = vpop.permute.xlu0 %856 }
 0x162   : > { %1409 = vmatprep.subr.bf16.mxu0 %v791_v62  ;;  %v881_v34 = vsel %vm532_vm2, %v859_v57, %v861_v58  ;;  %v880_v18 = vsel %vm532_vm2, %v857_v0, %v859_v57 }
 0x164   : > { %1410 = vmatpush1.bf16.msra.mxu0 %v790_v4 }
 0x165   : > { %v865_v9 = vpop.permute.xlu1 %864  ;;  %1195 = vperm.xlu0 %3011, %v1169_v1   ;;  %1175 = vperm.xlu1 %3010, %v1165_v2   ;;  %v867_v12 = vpop.permute.xlu0 %866 }
 0x166   : > { %1411 = vmatprep.subr.bf16.mxu0 %v793_v10  ;;  %v883_v38 = vsel %vm532_vm2, %v865_v9, %v867_v12  ;;  %v3039_v10 = vld [vmem:[%s4194_s1 + $0x8] ss:$20 sps:$4 sm:$0xff]  }
 0x167   : > { %1389 = vmatmul.mubr.bf16.gmra.mrb[12].mxu0 %v3038_v7  ;;  %v3042_v12 = vld [vmem:[%s4194_s1 + $0x34] ss:$20 sps:$4 sm:$0xff]  }
 0x168   : > { %1412 = vmatpush1.bf16.msra.mxu0 %v792_v14  ;;  %1431 = vmatprep.mubr.bf16.mxu0 %v3041_v8  ;;  %v3047_v14 = vld [vmem:[%s4194_s1 + $0x58] ss:$20 sps:$4 sm:$0xff]  }
 0x169   : > { %v863_v29 = vpop.permute.xlu1 %862  ;;  %1205 = vperm.xlu0 %3011, %v1171_v28   ;;  %1185 = vperm.xlu1 %3010, %v1167_v13   ;;  %v871_v60 = vpop.permute.xlu0 %870  ;;  %v3044_v28 = vld [vmem:[%s4194_s1 + $0x30] ss:$20 sps:$4 sm:$0xff]  }
 0x16a   : > { %1413 = vmatprep.subr.bf16.mxu0 %v795_v53  ;;  %v882_v16 = vsel %vm532_vm2, %v863_v29, %v865_v9  ;;  %v3045_v13 = vld [vmem:[%s4194_s1 + $0x5c] ss:$20 sps:$4 sm:$0xff]   ;;  %v3048_v29 = vld [vmem:[%s4194_s1 + $0x84] ss:$20 sps:$4 sm:$0xff]   ;;  %v3050_v53 = vld [vmem:[%s4194_s1 + $0x80] ss:$20 sps:$4 sm:$0xff]  }
 0x16c   : > { %1414 = vmatpush1.bf16.msra.mxu0 %v794_v17 }
 0x16d   : > { %v873_v19 = vpop.permute.xlu1 %872  ;;  %1613 = vrot.lane.b32.xlu0 %v3229_v47, %s3099_s11  ;;  %1190 = vperm.xlu1 %3010, %v1168_v52   ;;  %v869_v25 = vpop.permute.xlu0 %868 }
 0x16e   : > { %1415 = vmatprep.subr.bf16.mxu0 %v881_v34  ;;  %v885_v33 = vsel %vm532_vm2, %v871_v60, %v873_v19  ;;  %v884_v36 = vsel %vm532_vm2, %v869_v25, %v871_v60 }
 0x170   : > { %1416 = vmatpush1.bf16.msra.mxu0 %v880_v18 }
 0x171   : > { %v877_v23 = vpop.permute.xlu1 %876  ;;  %1625 = vrot.lane.b32.xlu0 %v3229_v47, %s3099_s11  ;;  %1200 = vperm.xlu1 %3010, %v1170_v22   ;;  %v879_v37 = vpop.permute.xlu0 %878 }
 0x172   : > { %1417 = vmatprep.subr.bf16.mxu0 %v883_v38  ;;  %v887_v30 = vsel %vm532_vm2, %v877_v23, %v879_v37 }
 0x174   : > { %1418 = vmatpush1.bf16.msra.mxu0 %v882_v16 }
 0x175   : > { %v875_v26 = vpop.permute.xlu1 %874  ;;  %1210 = vperm.xlu1 %3010, %v1172_v31   ;;  %1419 = vmatprep.subr.bf16.mxu0 %v885_v33  ;;  %v931_v39 = vpop.permute.xlu0 %930 }
 0x176   : > { %v886_v41 = vsel %vm532_vm2, %v875_v26, %v877_v23  ;;  %3013 = vrot.lane.b32.xlu0 %v3092_v5, %s3093_s29 }
 0x178   : > { %1420 = vmatpush1.bf16.msra.mxu0 %v884_v36 }
 0x179   : > { %1619 = vrot.lane.b32.xlu1 %v3229_v47, %s3099_s11  ;;  %1421 = vmatprep.subr.bf16.mxu0 %v887_v30  ;;  %v3007_v40 = vpop.permute.xlu1 %3006  ;;  %v929_v42 = vpop.permute.xlu0 %928 }
 0x17a   : > { %v3009_v43 = vunpack.i.h.bf16 %v3007_v40  ;;  %v3008_v24 = vunpack.i.l.bf16 %v3007_v40  ;;  %v953_v49 = vsel %vm952_vm7, %v929_v42, %v931_v39 }
 0x17c   : > { %1422 = vmatpush1.bf16.msra.mxu0 %v886_v41  ;;  %v954_v46 = vsel %vm952_vm7, %v931_v39, %v3008_v24  ;;  %v3052_v24 = vld [vmem:[%s4194_s1 + $0x38] ss:$20 sps:$4 sm:$0xff]   ;;  %v3053_v41 = vld [vmem:[%s4194_s1 + $0x60] ss:$20 sps:$4 sm:$0xff]  }
 0x17d   : > { %1631 = vrot.lane.b32.xlu1 %v3229_v47, %s3099_s11  ;;  %v937_v44 = vpop.permute.xlu1 %936  ;;  %1423 = vmatprep.subr.bf16.mxu0 %v954_v46  ;;  %v3054_v46 = vld [vmem:[%s4194_s1 + $0x88] ss:$20 sps:$4 sm:$0xff]  }
 0x17e   : > { %v935_v57 = vpop.permute.xlu0 %934  ;;  %v956_v35 = vsel %vm952_vm7, %v937_v44, %v3009_v43  ;;  %v3051_v43 = vld [vmem:[%s4194_s1 + $0x10] ss:$20 sps:$4 sm:$0xff]  }
 0x17f   : > { %v955_v45 = vsel %vm952_vm7, %v935_v57, %v937_v44 }
 0x180   : > { %1424 = vmatpush1.bf16.msra.mxu0 %v953_v49 }
 0x181   : > { %v943_v58 = vpop.permute.xlu1 %942  ;;  %1425 = vmatprep.subr.bf16.mxu0 %v956_v35  ;;  %3018 = vrot.lane.b32.xlu1 %v3092_v5, %s3093_s29 }
 0x182   : > { %v945_v62 = vpop.permute.xlu0 %944 }
 0x183   : > { %v958_v0 = vsel %vm952_vm7, %v943_v58, %v945_v62 }
 0x184   : > { %1426 = vmatpush1.bf16.msra.mxu0 %v955_v45 }
 0x185   : > { %v941_v1 = vpop.permute.xlu1 %940  ;;  %1427 = vmatprep.subr.bf16.mxu0 %v958_v0 }
 0x186   : > { %v957_v47 = vsel %vm952_vm7, %v941_v1, %v943_v58  ;;  %v949_v2 = vpop.permute.xlu0 %948 }
 0x188   : > { %1428 = vmatpush1.bf16.msra.mxu0 %v957_v47 }
 0x189   : > { %v951_v4 = vpop.permute.xlu1 %950 }
 0x18a   : > { %v947_v7 = vpop.permute.xlu0 %946  ;;  %v960_v8 = vsel %vm952_vm7, %v949_v2, %v951_v4 }
 0x18b   : > { %v959_v9 = vsel %vm952_vm7, %v947_v7, %v949_v2  ;;  %1429 = vmatprep.subr.bf16.mxu0 %v960_v8 }
 0x18c   : > { %1430 = vmatpush1.bf16.msra.mxu0 %v959_v9 }
 0x18f   : > { %1432 = vmatmul.mubr.bf16.vlgmr.msra.gmra.mrb[0].mxu0 %v3039_v10 }
 0x190   : > { %1441 = vmatprep.mubr.bf16.mxu0 %v3042_v12 }
 0x197   : > { %1442 = vmatmul.mubr.bf16.gmra.mrb[4].mxu0 %v3044_v28 }
 0x198   : > { %1451 = vmatprep.mubr.bf16.mxu0 %v3045_v13 }
 0x19f   : > { %1452 = vmatmul.mubr.bf16.gmra.mrb[8].mxu0 %v3047_v14 }
 0x1a0   : > { %1461 = vmatprep.mubr.bf16.mxu0 %v3048_v29 }
 0x1a7   : > { %1462 = vmatmul.mubr.bf16.gmra.mrb[12].mxu0 %v3050_v53 }
 0x1a8   : > { %1504 = vmatprep.mubr.bf16.mxu0 %v3092_v5 }
 0x1ba   : > { %v1026_v60 = vpop.permute.xlu0 %1025 }
 0x1bf   : > { %v1024_v52 = vpop.permute.xlu1 %1023  ;;  %v1030_v17 = vpop.permute.xlu0 %1029 }
 0x1c0   : > { %v1046_v34 = vsel %vm349_vm0, %v1024_v52, %v1026_v60 }
 0x1c1   : > { %1472 = vmatprep.subr.bf16.mxu0 %v1046_v34 }
 0x1c3   : > { %v1022_v18 = vpop.permute.xlu1 %1021  ;;  %v1028_v19 = vpop.permute.xlu0 %1027 }
 0x1c4   : > { %v1045_v25 = vsel %vm349_vm0, %v1022_v18, %v1024_v52  ;;  %v1047_v37 = vsel %vm349_vm0, %v1028_v19, %v1030_v17 }
 0x1c5   : > { %1473 = vmatpush1.bf16.msra.mxu0 %v1045_v25 }
 0x1c7   : > { %v1032_v22 = vpop.permute.xlu1 %1031  ;;  %v1038_v38 = vpop.permute.xlu0 %1037 }
 0x1c8   : > { %v1048_v23 = vsel %vm349_vm0, %v1030_v17, %v1032_v22 }
 0x1c9   : > { %1474 = vmatprep.subr.bf16.mxu0 %v1048_v23 }
 0x1ca   : > { %1475 = vmatpush1.bf16.msra.mxu0 %v1047_v37 }
 0x1cb   : > { %v1036_v31 = vpop.permute.xlu1 %1035  ;;  %v1042_v16 = vpop.permute.xlu0 %1041 }
 0x1cc   : > { %v1050_v33 = vsel %vm349_vm0, %v1036_v31, %v1038_v38 }
 0x1cd   : > { %1476 = vmatprep.subr.bf16.mxu0 %v1050_v33 }
 0x1cf   : > { %v1034_v26 = vpop.permute.xlu1 %1033  ;;  %v1040_v36 = vpop.permute.xlu0 %1039 }
 0x1d0   : > { %v1049_v39 = vsel %vm349_vm0, %v1034_v26, %v1036_v31  ;;  %v1051_v42 = vsel %vm349_vm0, %v1040_v36, %v1042_v16 }
 0x1d1   : > { %1477 = vmatpush1.bf16.msra.mxu0 %v1049_v39 }
 0x1d3   : > { %v1044_v30 = vpop.permute.xlu1 %1043 }
 0x1d4   : > { %v1052_v40 = vsel %vm349_vm0, %v1042_v16, %v1044_v30 }
 0x1d5   : > { %1478 = vmatprep.subr.bf16.mxu0 %v1052_v40 }
 0x1d6   : > { %1479 = vmatpush1.bf16.msra.mxu0 %v1051_v42 }
 0x1d9   : > { %2849 = vmatmul.mubr.msk.bf16.vlgmr.msra.gmra.mrb[0].mxu0 %vm1313_vm8, %v3051_v43 }
 0x1da   : > { %1514 = vmatprep.mubr.bf16.mxu0 %v3092_v5 }
 0x1e0   : > { %v1181_v45 = vpop.permute.xlu0 %1180 }
 0x1e1   : > { %2850 = vmatmul.mubr.msk.bf16.gmra.mrb[4].mxu0 %vm1313_vm8, %v3052_v24 }
 0x1e2   : > { %1524 = vmatprep.mubr.bf16.mxu0 %v3092_v5 }
 0x1e4   : > { %v1176_v49 = vpop.permute.xlu1 %1175  ;;  %v1196_v16 = vpop.permute.xlu0 %1195 }
 0x1e8   : > { %v1186_v47 = vpop.permute.xlu1 %1185 }
 0x1e9   : > { %2851 = vmatmul.mubr.msk.bf16.gmra.mrb[8].mxu0 %vm1313_vm8, %v3053_v41 }
 0x1ea   : > { %1534 = vmatprep.mubr.bf16.mxu0 %v3092_v5 }
 0x1ec   : > { %v1191_v29 = vpop.permute.xlu1 %1190 }
 0x1f0   : > { %v1201_v40 = vpop.permute.xlu1 %1200 }
 0x1f1   : > { %2852 = vmatmul.mubr.msk.bf16.gmra.mrb[12].mxu0 %vm1313_vm8, %v3054_v46 }
 0x2ac   : > { %v1506_v44 = vpop.f32.mrb[0].mxu0 }
 0x2ad   : > { %v2881_v57 = vadd.f32 %v1506_v44, %v1176_v49  ;;  %v1508_v35 = vpop.f32.mrb[1].mxu0 }
 0x2ae   : > { %v2882_v58 = vadd.f32 %v1508_v35, %v1176_v49  ;;  %v1510_v62 = vpop.f32.mrb[2].mxu0 }
 0x2af   : > { %v2883_v0 = vadd.f32 %v1510_v62, %v1181_v45  ;;  %v1512_v1 = vpop.f32.mrb[3].mxu0  ;;  %v1545_v4 = vmax.f32 %v2881_v57, 0.0  ;;  %v1206_v62 = vpop.permute.xlu0 %1205 }
 0x2b0   : > { %v2884_v2 = vadd.f32 %v1512_v1, %v1181_v45  ;;  %v1546_v8 = vmax.f32 %v2882_v58, 0.0 }
 0x2b1   : > { %v1547_v7 = vmax.f32 %v2883_v0, 0.0 }
 0x2b2   : > { %v1548_v9 = vmax.f32 %v2884_v2, 0.0 }
 0x2b3   : > { %v3727_v10 = vpack.c.bf16 %v1547_v7, %v1545_v4  ;;  %v1211_v7 = vpop.permute.xlu1 %1210 }
 0x2b4   : > { %v3729_v12 = vpack.c.bf16 %v1548_v9, %v1546_v8  ;;  %v1516_v28 = vpop.f32.mrb[4].mxu0 }
 0x2b5   : > { %v2885_v13 = vadd.f32 %v1516_v28, %v1186_v47  ;;  %v1518_v14 = vpop.f32.mrb[5].mxu0  ;;  %1687 = vrot.lane.b32.xlu0 %v3727_v10, %s3093_s29  ;;  %v1590_v34 = vmul.bf16 %v3727_v10, %v3255_v55  ;;  %v1746_v31 = vmul.bf16 %v3727_v10, %v3314_v11 }
 0x2b6   : > { %v2886_v53 = vadd.f32 %v1518_v14, %v1186_v47  ;;  %v1520_v60 = vpop.f32.mrb[6].mxu0  ;;  %1689 = vrot.lane.b32.xlu1 %v3729_v12, %s3093_s29  ;;  %v1591_v19 = vmul.bf16 %v3729_v12, %v3233_v48  ;;  %v1747_v39 = vmul.bf16 %v3729_v12, %v3293_v6 }
 0x2b7   : > { %v2887_v52 = vadd.f32 %v1520_v60, %v1191_v29  ;;  %v1522_v17 = vpop.f32.mrb[7].mxu0  ;;  %v1549_v25 = vmax.f32 %v2885_v13, 0.0 }
 0x2b8   : > { %v2888_v18 = vadd.f32 %v1522_v17, %v1191_v29  ;;  %v1550_v38 = vmax.f32 %v2886_v53, 0.0 }
 0x2b9   : > { %v1551_v22 = vmax.f32 %v2887_v52, 0.0  ;;  %1615 = vrot.lane.b32.xlu0 %v1590_v34, %s3099_s11 }
 0x2ba   : > { %v1552_v23 = vmax.f32 %v2888_v18, 0.0  ;;  %1617 = vrot.lane.b32.xlu1 %v1591_v19, %s3099_s11 }
 0x2bb   : > { %v3741_v37 = vpack.c.bf16 %v1551_v22, %v1549_v25 }
 0x2bc   : > { %v3745_v33 = vpack.c.bf16 %v1552_v23, %v1550_v38  ;;  %v1526_v26 = vpop.f32.mrb[8].mxu0 }
 0x2bd   : > { %v2889_v36 = vadd.f32 %v1526_v26, %v1196_v16  ;;  %v1528_v30 = vpop.f32.mrb[9].mxu0  ;;  %1771 = vrot.lane.b32.xlu0 %v1746_v31, %s3098_s10  ;;  %v1593_v47 = vmul.bf16 %v3741_v37, %v3255_v55  ;;  %v1749_v38 = vmul.bf16 %v3741_v37, %v3314_v11  ;;  %v1831_v26 = vmul.bf16 %v3729_v12, %v3259_v56 }
 0x2be   : > { %v2890_v42 = vadd.f32 %v1528_v30, %v1196_v16  ;;  %v1530_v43 = vpop.f32.mrb[10].mxu0  ;;  %1773 = vrot.lane.b32.xlu1 %v1747_v39, %s3098_s10  ;;  %v1594_v58 = vmul.bf16 %v3745_v33, %v3233_v48  ;;  %v1750_v23 = vmul.bf16 %v3745_v33, %v3293_v6  ;;  %v1830_v16 = vmul.bf16 %v3727_v10, %v3279_v63 }
 0x2bf   : > { %v2891_v24 = vadd.f32 %v1530_v43, %v1201_v40  ;;  %v1532_v41 = vpop.f32.mrb[11].mxu0  ;;  %v1553_v49 = vmax.f32 %v2889_v36, 0.0  ;;  %v1833_v39 = vmul.bf16 %v3741_v37, %v3279_v63  ;;  %v1929_v43 = vmul.bf16 %v3727_v10, %v3342_v20 }
 0x2c0   : > { %v2892_v46 = vadd.f32 %v1532_v41, %v1201_v40  ;;  %v1554_v57 = vmax.f32 %v2890_v42, 0.0  ;;  %v1930_v42 = vmul.bf16 %v3729_v12, %v3389_v27 }
 0x2c1   : > { %v1555_v44 = vmax.f32 %v2891_v24, 0.0  ;;  %1695 = vrot.lane.b32.xlu0 %v3745_v33, %s3093_s29  ;;  %v1933_v24 = vmul.bf16 %v3745_v33, %v3389_v27 }
 0x2c2   : > { %v1556_v35 = vmax.f32 %v2892_v46, 0.0  ;;  %1693 = vrot.lane.b32.xlu1 %v3741_v37, %s3093_s29 }
 0x2c3   : > { %v3755_v45 = vpack.c.bf16 %v1555_v44, %v1553_v49  ;;  %v1614_v49 = vpop.permute.xlu0 %1613  ;;  %v1620_v44 = vpop.permute.xlu1 %1619 }
 0x2c4   : > { %v3759_v0 = vpack.c.bf16 %v1556_v35, %v1554_v57  ;;  %v1536_v1 = vpop.f32.mrb[12].mxu0  ;;  %v2014_v57 = vmul.bf16 %v3729_v12, %v3412_v54  ;;  %v2017_v35 = vmul.bf16 %v3745_v33, %v3412_v54 }
 0x2c5   : > { %v2893_v2 = vadd.f32 %v1536_v1, %v1206_v62  ;;  %v1538_v4 = vpop.f32.mrb[13].mxu0  ;;  %1623 = vrot.lane.b32.xlu0 %v1594_v58, %s3099_s11  ;;  %v1596_v34 = vmul.bf16 %v3755_v45, %v3255_v55  ;;  %v1836_v36 = vmul.bf16 %v3755_v45, %v3279_v63  ;;  %v1935_v41 = vmul.bf16 %v3755_v45, %v3342_v20 }
 0x2c6   : > { %v2894_v8 = vadd.f32 %v1538_v4, %v1206_v62  ;;  %v1540_v9 = vpop.f32.mrb[14].mxu0  ;;  %1621 = vrot.lane.b32.xlu1 %v1593_v47, %s3099_s11  ;;  %v1597_v19 = vmul.bf16 %v3759_v0, %v3233_v48  ;;  %v1837_v30 = vmul.bf16 %v3759_v0, %v3259_v56  ;;  %v2013_v62 = vmul.bf16 %v3727_v10, %v3406_v50 }
 0x2c7   : > { %v2895_v28 = vadd.f32 %v1540_v9, %v1211_v7  ;;  %v1542_v13 = vpop.f32.mrb[15].mxu0  ;;  %v1557_v29 = vmax.f32 %v2893_v2, 0.0  ;;  %v1626_v58 = vpop.permute.xlu0 %1625 }
 0x2c8   : > { %v2896_v14 = vadd.f32 %v1542_v13, %v1211_v7  ;;  %v1558_v60 = vmax.f32 %v2894_v8, 0.0  ;;  %v2020_v7 = vmul.bf16 %v3759_v0, %v3412_v54 }
 0x2c9   : > { %v1559_v53 = vmax.f32 %v2895_v28, 0.0  ;;  %1701 = vrot.lane.b32.xlu0 %v3759_v0, %s3093_s29 }
 0x2ca   : > { %v1560_v52 = vmax.f32 %v2896_v14, 0.0  ;;  %1699 = vrot.lane.b32.xlu1 %v3755_v45, %s3093_s29 }
 0x2cb   : > { %v3769_v17 = vpack.c.bf16 %v1559_v53, %v1557_v29  ;;  %v3894_v1 = vpop.permute.xlu0 %3013 }
 0x2cc   : > { %v3773_v18 = vpack.c.bf16 %v1560_v52, %v1558_v60 }
 0x2cd   : > { %1627 = vrot.lane.b32.xlu0 %v1596_v34, %s3099_s11  ;;  %v1599_v22 = vmul.bf16 %v3769_v17, %v3255_v55  ;;  %v1753_v55 = vmul.bf16 %v3759_v0, %v3293_v6  ;;  %v1755_v31 = vmul.bf16 %v3769_v17, %v3314_v11  ;;  %v1839_v40 = vmul.bf16 %v3769_v17, %v3279_v63 }
 0x2ce   : > { %1629 = vrot.lane.b32.xlu1 %v1597_v19, %s3099_s11  ;;  %v1600_v25 = vmul.bf16 %v3773_v18, %v3233_v48  ;;  %v1752_v48 = vmul.bf16 %v3755_v45, %v3314_v11  ;;  %v1834_v11 = vmul.bf16 %v3745_v33, %v3259_v56  ;;  %v1840_v63 = vmul.bf16 %v3773_v18, %v3259_v56 }
 0x2cf   : > { %v1936_v56 = vmul.bf16 %v3759_v0, %v3389_v27  ;;  %v1938_v46 = vmul.bf16 %v3769_v17, %v3342_v20  ;;  %v1939_v2 = vmul.bf16 %v3773_v18, %v3389_v27  ;;  %v2019_v27 = vmul.bf16 %v3755_v45, %v3406_v50 }
 0x2d0   : > { %v2022_v13 = vmul.bf16 %v3769_v17, %v3406_v50  ;;  %v2023_v34 = vmul.bf16 %v3773_v18, %v3412_v54 }
 0x2d1   : > { %1705 = vrot.lane.b32.xlu0 %v3769_v17, %s3093_s29 }
 0x2d2   : > { %1707 = vrot.lane.b32.xlu1 %v3773_v18, %s3093_s29 }
 0x2d5   : > { %1635 = vrot.lane.b32.xlu0 %v1600_v25, %s3099_s11 }
 0x2d6   : > { %1633 = vrot.lane.b32.xlu1 %v1599_v22, %s3099_s11 }
 0x2d9   : > { %1769 = vrot.lane.b32.xlu0 %v3287_v3, %s3098_s10 }
 0x2da   : > { %1777 = vrot.lane.b32.xlu1 %v1749_v38, %s3098_s10 }
 0x2dd   : > { %1779 = vrot.lane.b32.xlu0 %v1750_v23, %s3098_s10 }
 0x2de   : > { %1775 = vrot.lane.b32.xlu1 %v3287_v3, %s3098_s10 }
 0x2e1   : > { %1783 = vrot.lane.b32.xlu0 %v1752_v48, %s3098_s10 }
 0x2e2   : > { %1785 = vrot.lane.b32.xlu1 %v1753_v55, %s3098_s10 }
 0x2e5   : > { %1781 = vrot.lane.b32.xlu0 %v3287_v3, %s3098_s10 }
 0x2e6   : > { %1789 = vrot.lane.b32.xlu1 %v1755_v31, %s3098_s10 }
 0x2e9   : > { %1855 = vrot.lane.b32.xlu0 %v1830_v16, %s3097_s9 }
 0x2ea   : > { %1787 = vrot.lane.b32.xlu1 %v3287_v3, %s3098_s10  ;;  %v1756_v3 = vmul.bf16 %v3773_v18, %v3293_v6  ;;  %v3057_v6 = vld [vmem:[%s4196_s3 + $0x4] ss:$20 sps:$4 sm:$0xff]  }
 0x2eb   : > { %2497 = vmatprep.mubr.bf16.mxu1 %v3057_v6 }
 0x2ed   : > { %1853 = vrot.lane.b32.xlu0 %v3263_v59, %s3097_s9 }
 0x2ee   : > { %1857 = vrot.lane.b32.xlu1 %v1831_v26, %s3097_s9 }
 0x2f1   : > { %1863 = vrot.lane.b32.xlu0 %v1834_v11, %s3097_s9 }
 0x2f2   : > { %1861 = vrot.lane.b32.xlu1 %v1833_v39, %s3097_s9 }
 0x2f5   : > { %1791 = vrot.lane.b32.xlu0 %v1756_v3, %s3098_s10  ;;  %v2170_v3 = vmul.bf16 %v3729_v12, %v3549_v15 }
 0x2f6   : > { %1859 = vrot.lane.b32.xlu1 %v3263_v59, %s3097_s9 }
 0x2f9   : > { %1867 = vrot.lane.b32.xlu0 %v1836_v36, %s3097_s9 }
 0x2fa   : > { %1869 = vrot.lane.b32.xlu1 %v1837_v30, %s3097_s9 }
 0x2fd   : > { %1865 = vrot.lane.b32.xlu0 %v3263_v59, %s3097_s9 }
 0x2fe   : > { %1873 = vrot.lane.b32.xlu1 %v1839_v40, %s3097_s9 }
 0x301   : > { %1955 = vrot.lane.b32.xlu0 %v1930_v42, %s3095_s7  ;;  %v3015_v42 = vunpack.i.l.bf16 %v3894_v1 }
 0x302   : > { %1871 = vrot.lane.b32.xlu1 %v3263_v59, %s3097_s9  ;;  %v1932_v59 = vmul.bf16 %v3741_v37, %v3342_v20  ;;  %v3886_v20 = vpop.permute.xlu1 %1631 }
 0x305   : > { %1875 = vrot.lane.b32.xlu0 %v1840_v63, %s3097_s9 }
 0x306   : > { %1957 = vrot.lane.b32.xlu1 %v3365_v32, %s3095_s7  ;;  %v3897_v47 = vpop.permute.xlu1 %3018 }
 0x309   : > { %1953 = vrot.lane.b32.xlu0 %v1929_v43, %s3095_s7  ;;  %v2169_v43 = vmul.bf16 %v3727_v10, %v3545_v21 }
 0x30a   : > { %1961 = vrot.lane.b32.xlu1 %v1933_v24, %s3095_s7 }
 0x30d   : > { %1963 = vrot.lane.b32.xlu0 %v3365_v32, %s3095_s7 }
 0x30e   : > { %1959 = vrot.lane.b32.xlu1 %v1932_v59, %s3095_s7 }
 0x311   : > { %1967 = vrot.lane.b32.xlu0 %v1936_v56, %s3095_s7 }
 0x312   : > { %1969 = vrot.lane.b32.xlu1 %v3365_v32, %s3095_s7 }
 0x315   : > { %1965 = vrot.lane.b32.xlu0 %v1935_v41, %s3095_s7  ;;  %v2173_v41 = vmul.bf16 %v3745_v33, %v3549_v15 }
 0x316   : > { %1971 = vrot.lane.b32.xlu1 %v1938_v46, %s3095_s7  ;;  %v3016_v46 = vunpack.i.h.bf16 %v3894_v1 }
 0x319   : > { %1975 = vrot.lane.b32.xlu0 %v3365_v32, %s3095_s7  ;;  %v2016_v32 = vmul.bf16 %v3741_v37, %v3406_v50 }
 0x31a   : > { %2041 = vrot.lane.b32.xlu1 %v3423_v61, %s3096_s8 }
 0x31d   : > { %2039 = vrot.lane.b32.xlu0 %v2014_v57, %s3096_s8 }
 0x31e   : > { %2045 = vrot.lane.b32.xlu1 %v2017_v35, %s3096_s8 }
 0x321   : > { %2037 = vrot.lane.b32.xlu0 %v2013_v62, %s3096_s8 }
 0x322   : > { %2043 = vrot.lane.b32.xlu1 %v2016_v32, %s3096_s8  ;;  %v2176_v32 = vmul.bf16 %v3759_v0, %v3549_v15 }
 0x325   : > { %2047 = vrot.lane.b32.xlu0 %v3423_v61, %s3096_s8 }
 0x326   : > { %1973 = vrot.lane.b32.xlu1 %v1939_v2, %s3095_s7 }
 0x327   : > { %v3904_v4 = vpop.permute.xlu0 %1687 }
 0x328   : > { %v1690_v8 = vpop.permute.xlu1 %1689  ;;  %v1709_v24 = vsel %vm475_vm6, %v3015_v42, %v3904_v4 }
 0x329   : > { %2051 = vrot.lane.b32.xlu0 %v2020_v7, %s3096_s8  ;;  %v1710_v6 = vsel %vm475_vm6, %v3904_v4, %v1690_v8  ;;  %v3021_v7 = vunpack.i.h.bf16 %v3897_v47 }
 0x32a   : > { %2053 = vrot.lane.b32.xlu1 %v3423_v61, %s3096_s8 }
 0x32b   : > { %v1616_v9 = vpop.permute.xlu0 %1615 }
 0x32c   : > { %v1618_v28 = vpop.permute.xlu1 %1617  ;;  %v1637_v29 = vsel %vm402_vm5, %v1614_v49, %v1616_v9 }
 0x32d   : > { %2049 = vrot.lane.b32.xlu0 %v2019_v27, %s3096_s8  ;;  %v1638_v14 = vsel %vm402_vm5, %v1616_v9, %v1618_v28  ;;  %v2175_v9 = vmul.bf16 %v3755_v45, %v3545_v21 }
 0x32e   : > { %2055 = vrot.lane.b32.xlu1 %v2022_v13, %s3096_s8  ;;  %2465 = vmatprep.subr.bf16.mxu1 %v1638_v14 }
 0x32f   : > { %2466 = vmatpush1.bf16.msra.mxu1 %v1637_v29  ;;  %v3919_v53 = vpop.permute.xlu0 %1771 }
 0x330   : > { %v3921_v60 = vpop.permute.xlu1 %1773 }
 0x331   : > { %2059 = vrot.lane.b32.xlu0 %v3423_v61, %s3096_s8  ;;  %v1794_v13 = vsel %vm585_vm4, %v3919_v53, %v3921_v60  ;;  %v2178_v60 = vmul.bf16 %v3769_v17, %v3545_v21 }
 0x332   : > { %3023 = vrot.lane.b32.xlu1 %v3092_v5, %s3100_s14 }
 0x333   : > { %v1696_v50 = vpop.permute.xlu0 %1695 }
 0x334   : > { %v1694_v52 = vpop.permute.xlu1 %1693 }
 0x335   : > { %2111 = vrot.lane.b32.xlu0 %v3729_v12, %s3100_s14  ;;  %v1712_v56 = vsel %vm475_vm6, %v1694_v52, %v1696_v50 }
 0x336   : > { %2057 = vrot.lane.b32.xlu1 %v2023_v34, %s3096_s8 }
 0x337   : > { %v1624_v19 = vpop.permute.xlu0 %1623 }
 0x338   : > { %v1622_v25 = vpop.permute.xlu1 %1621 }
 0x339   : > { %2109 = vrot.lane.b32.xlu0 %v3727_v10, %s3100_s14  ;;  %v1640_v61 = vsel %vm402_vm5, %v1622_v25, %v1624_v19  ;;  %v1639_v22 = vsel %vm402_vm5, %v1620_v44, %v1622_v25  ;;  %v1711_v44 = vsel %vm475_vm6, %v3016_v46, %v1694_v52 }
 0x33a   : > { %2117 = vrot.lane.b32.xlu1 %v3745_v33, %s3100_s14  ;;  %2467 = vmatprep.subr.bf16.mxu1 %v1640_v61 }
 0x33b   : > { %2468 = vmatpush1.bf16.msra.mxu1 %v1639_v22  ;;  %v1702_v54 = vpop.permute.xlu0 %1701 }
 0x33c   : > { %v1700_v38 = vpop.permute.xlu1 %1699 }
 0x33d   : > { %2115 = vrot.lane.b32.xlu0 %v3741_v37, %s3100_s14  ;;  %v1714_v35 = vsel %vm475_vm6, %v1700_v38, %v1702_v54  ;;  %v2687_v54 = vld [vmem:[%s4197_s4 + $0x18] sm:$0xff] }
 0x33e   : > { %2123 = vrot.lane.b32.xlu1 %v3759_v0, %s3100_s14 }
 0x33f   : > { %v1628_v23 = vpop.permute.xlu0 %1627 }
 0x340   : > { %v1630_v48 = vpop.permute.xlu1 %1629  ;;  %v1641_v31 = vsel %vm402_vm5, %v1626_v58, %v1628_v23  ;;  %v2172_v58 = vmul.bf16 %v3741_v37, %v3545_v21  ;;  %v2686_v21 = vld [vmem:[%s4197_s4 + $0x10] sm:$0xff] }
 0x341   : > { %2125 = vrot.lane.b32.xlu0 %v3092_v5, %s3100_s14  ;;  %v1642_v55 = vsel %vm402_vm5, %v1628_v23, %v1630_v48  ;;  %v2688_v23 = vld [vmem:[%s4197_s4 + $0x20] sm:$0xff] }
 0x342   : > { %2121 = vrot.lane.b32.xlu1 %v3755_v45, %s3100_s14  ;;  %2469 = vmatprep.subr.bf16.mxu1 %v1642_v55 }
 0x343   : > { %2470 = vmatpush1.bf16.msra.mxu1 %v1641_v31  ;;  %v1706_v16 = vpop.permute.xlu0 %1705 }
 0x344   : > { %v1708_v26 = vpop.permute.xlu1 %1707  ;;  %v1715_v27 = vsel %vm475_vm6, %v3021_v7, %v1706_v16  ;;  %v3063_v7 = vld [vmem:[%s4196_s3 + $0x50] ss:$20 sps:$4 sm:$0xff]  }
 0x345   : > { %2129 = vrot.lane.b32.xlu0 %v3773_v18, %s3100_s14  ;;  %v1716_v4 = vsel %vm475_vm6, %v1706_v16, %v1708_v26  ;;  %v2689_v16 = vld [vmem:[%s4197_s4 + $0x28] sm:$0xff] }
 0x346   : > { %2131 = vrot.lane.b32.xlu1 %v3092_v5, %s3100_s14 }
 0x347   : > { %v1636_v11 = vpop.permute.xlu0 %1635 }
 0x348   : > { %v1634_v39 = vpop.permute.xlu1 %1633 }
 0x349   : > { %2127 = vrot.lane.b32.xlu0 %v3769_v17, %s3100_s14  ;;  %v1644_v36 = vsel %vm402_vm5, %v1634_v39, %v1636_v11  ;;  %v1643_v30 = vsel %vm402_vm5, %v3886_v20, %v1634_v39  ;;  %v3020_v20 = vunpack.i.l.bf16 %v3897_v47  ;;  %v2179_v47 = vmul.bf16 %v3773_v18, %v3549_v15  ;;  %v2684_v15 = vld [vmem:[%s4197_s4] sm:$0xff]  ;;  %v2690_v39 = vld [vmem:[%s4197_s4 + $0x30] sm:$0xff] }
 0x34a   : > { %2195 = vrot.lane.b32.xlu1 %v2170_v3, %s3094_s30  ;;  %2471 = vmatprep.subr.bf16.mxu1 %v1644_v36 }
 0x34b   : > { %2472 = vmatpush1.bf16.msra.mxu1 %v1643_v30  ;;  %v1770_v40 = vpop.permute.xlu0 %1769  ;;  %v1713_v1 = vsel %vm475_vm6, %v3020_v20, %v1700_v38  ;;  %v2691_v30 = vld [vmem:[%s4197_s4 + $0x38] sm:$0xff] }
 0x34c   : > { %v1778_v63 = vpop.permute.xlu1 %1777  ;;  %2473 = vmatprep.subr.bf16.mxu1 %v1710_v6  ;;  %v1793_v29 = vsel %vm585_vm4, %v1770_v40, %v3919_v53  ;;  %v2685_v53 = vld [vmem:[%s4197_s4 + $0x8] sm:$0xff] }
 0x34d   : > { %2197 = vrot.lane.b32.xlu0 %v3539_v51, %s3094_s30 }
 0x34e   : > { %2193 = vrot.lane.b32.xlu1 %v2169_v43, %s3094_s30 }
 0x34f   : > { %v1780_v59 = vpop.permute.xlu0 %1779  ;;  %2474 = vmatpush1.bf16.msra.mxu1 %v1709_v24 }
 0x350   : > { %v1776_v49 = vpop.permute.xlu1 %1775  ;;  %2475 = vmatprep.subr.bf16.mxu1 %v1712_v56  ;;  %v1796_v52 = vsel %vm585_vm4, %v1778_v63, %v1780_v59 }
 0x351   : > { %2201 = vrot.lane.b32.xlu0 %v2173_v41, %s3094_s30 }
 0x352   : > { %2203 = vrot.lane.b32.xlu1 %v3539_v51, %s3094_s30 }
 0x353   : > { %v1784_v57 = vpop.permute.xlu0 %1783  ;;  %2476 = vmatpush1.bf16.msra.mxu1 %v1711_v44 }
 0x354   : > { %v1786_v62 = vpop.permute.xlu1 %1785  ;;  %2477 = vmatprep.subr.bf16.mxu1 %v1714_v35 }
 0x355   : > { %2199 = vrot.lane.b32.xlu0 %v2172_v58, %s3094_s30  ;;  %v1798_v25 = vsel %vm585_vm4, %v1784_v57, %v1786_v62  ;;  %v3058_v58 = vld [vmem:[%s4196_s3 + $0x2c] ss:$20 sps:$4 sm:$0xff]  }
 0x356   : > { %2207 = vrot.lane.b32.xlu1 %v2176_v32, %s3094_s30 }
 0x357   : > { %v1782_v2 = vpop.permute.xlu0 %1781  ;;  %2478 = vmatpush1.bf16.msra.mxu1 %v1713_v1  ;;  %v3060_v1 = vld [vmem:[%s4196_s3 + $0x28] ss:$20 sps:$4 sm:$0xff]  }
 0x358   : > { %v1790_v8 = vpop.permute.xlu1 %1789  ;;  %2479 = vmatprep.subr.bf16.mxu1 %v1716_v4  ;;  %v1797_v22 = vsel %vm585_vm4, %v1782_v2, %v1784_v57  ;;  %v3055_v57 = vld [vmem:[%s4196_s3] ss:$20 sps:$4 sm:$0xff]  }
 0x359   : > { %2209 = vrot.lane.b32.xlu0 %v3539_v51, %s3094_s30  ;;  %v3061_v4 = vld [vmem:[%s4196_s3 + $0x54] ss:$20 sps:$4 sm:$0xff]  }
 0x35a   : > { %2205 = vrot.lane.b32.xlu1 %v2175_v9, %s3094_s30 }
 0x35b   : > { %v1856_v28 = vpop.permute.xlu0 %1855  ;;  %2480 = vmatpush1.bf16.msra.mxu1 %v1715_v27 }
 0x35c   : > { %v1788_v14 = vpop.permute.xlu1 %1787  ;;  %2481 = vmatprep.subr.bf16.mxu1 %v1794_v13  ;;  %v3066_v13 = vld [vmem:[%s4196_s3 + $0x78] ss:$20 sps:$4 sm:$0xff]  }
 0x35d   : > { %2213 = vrot.lane.b32.xlu0 %v2179_v47, %s3094_s30  ;;  %v1799_v31 = vsel %vm585_vm4, %v1788_v14, %v1790_v8 }
 0x35e   : > { %2215 = vrot.lane.b32.xlu1 %v3539_v51, %s3094_s30  ;;  %v1795_v51 = vsel %vm585_vm4, %v1776_v49, %v1778_v63 }
 0x35f   : > { %v1854_v50 = vpop.permute.xlu0 %1853  ;;  %2482 = vmatpush1.bf16.msra.mxu1 %v1793_v29  ;;  %v3069_v29 = vld [vmem:[%s4196_s3 + $0xc] ss:$20 sps:$4 sm:$0xff]  }
 0x360   : > { %v1858_v34 = vpop.permute.xlu1 %1857  ;;  %2483 = vmatprep.subr.bf16.mxu1 %v1796_v52  ;;  %v1877_v36 = vsel %vm679_vm3, %v1854_v50, %v1856_v28 }
 0x361   : > { %2211 = vrot.lane.b32.xlu0 %v2178_v60, %s3094_s30  ;;  %v1878_v11 = vsel %vm679_vm3, %v1856_v28, %v1858_v34 }
 0x362   : > { %2694 = vperm.xlu1 %3010, %v2684_v15  }
 0x363   : > { %v1864_v19 = vpop.permute.xlu0 %1863  ;;  %2484 = vmatpush1.bf16.msra.mxu1 %v1795_v51 }
 0x364   : > { %v1862_v61 = vpop.permute.xlu1 %1861  ;;  %2485 = vmatprep.subr.bf16.mxu1 %v1798_v25 }
 0x365   : > { %2699 = vperm.xlu0 %3011, %v2685_v53   ;;  %v1880_v6 = vsel %vm679_vm3, %v1862_v61, %v1864_v19 }
 0x366   : > { %2704 = vperm.xlu1 %3010, %v2686_v21  }
 0x367   : > { %v1792_v38 = vpop.permute.xlu0 %1791  ;;  %2486 = vmatpush1.bf16.msra.mxu1 %v1797_v22 }
 0x368   : > { %v1860_v48 = vpop.permute.xlu1 %1859  ;;  %v1800_v55 = vsel %vm585_vm4, %v1790_v8, %v1792_v38 }
 0x369   : > { %2709 = vperm.xlu0 %3011, %v2687_v54   ;;  %2487 = vmatprep.subr.bf16.mxu1 %v1800_v55  ;;  %v1879_v63 = vsel %vm679_vm3, %v1860_v48, %v1862_v61 }
 0x36a   : > { %2714 = vperm.xlu1 %3010, %v2688_v23  }
 0x36b   : > { %v1868_v26 = vpop.permute.xlu0 %1867  ;;  %2488 = vmatpush1.bf16.msra.mxu1 %v1799_v31 }
 0x36c   : > { %v1870_v3 = vpop.permute.xlu1 %1869  ;;  %2489 = vmatprep.subr.bf16.mxu1 %v1878_v11 }
 0x36d   : > { %2719 = vperm.xlu0 %3011, %v2689_v16   ;;  %v1882_v24 = vsel %vm679_vm3, %v1868_v26, %v1870_v3 }
 0x36e   : > { %2724 = vperm.xlu1 %3010, %v2690_v39  }
 0x36f   : > { %v1866_v40 = vpop.permute.xlu0 %1865  ;;  %2490 = vmatpush1.bf16.msra.mxu1 %v1877_v36 }
 0x370   : > { %v1874_v42 = vpop.permute.xlu1 %1873  ;;  %2491 = vmatprep.subr.bf16.mxu1 %v1880_v6  ;;  %v1881_v56 = vsel %vm679_vm3, %v1866_v40, %v1868_v26 }
 0x371   : > { %2729 = vperm.xlu0 %3011, %v2691_v30  }
 0x373   : > { %v1956_v43 = vpop.permute.xlu0 %1955  ;;  %2492 = vmatpush1.bf16.msra.mxu1 %v1879_v63 }
 0x374   : > { %v1872_v59 = vpop.permute.xlu1 %1871  ;;  %2493 = vmatprep.subr.bf16.mxu1 %v1882_v24 }
 0x375   : > { %v1883_v44 = vsel %vm679_vm3, %v1872_v59, %v1874_v42 }
 0x377   : > { %v1876_v41 = vpop.permute.xlu0 %1875  ;;  %2494 = vmatpush1.bf16.msra.mxu1 %v1881_v56 }
 0x378   : > { %v1958_v46 = vpop.permute.xlu1 %1957  ;;  %v1884_v49 = vsel %vm679_vm3, %v1874_v42, %v1876_v41 }
 0x379   : > { %2495 = vmatprep.subr.bf16.mxu1 %v1884_v49  ;;  %v1978_v8 = vsel %vm626_vm1, %v1956_v43, %v1958_v46 }
 0x37b   : > { %v1954_v35 = vpop.permute.xlu0 %1953  ;;  %2496 = vmatpush1.bf16.msra.mxu1 %v1883_v44 }
 0x37c   : > { %v1962_v20 = vpop.permute.xlu1 %1961  ;;  %2538 = vmatprep.subr.bf16.mxu1 %v3729_v12 }
 0x37e   : > { %2498 = vmatmul.mubr.bf16.vlgmr.msra.gmra.mrb[0].mxu1 %v3055_v57 }
 0x37f   : > { %v1964_v62 = vpop.permute.xlu0 %1963  ;;  %2539 = vmatpush1.bf16.msra.mxu1 %v3727_v10  ;;  %2507 = vmatprep.mubr.bf16.mxu1 %v3058_v58 }
 0x380   : > { %v1960_v32 = vpop.permute.xlu1 %1959  ;;  %2540 = vmatprep.subr.bf16.mxu1 %v3745_v33 }
 0x383   : > { %v1968_v2 = vpop.permute.xlu0 %1967  ;;  %2541 = vmatpush1.bf16.msra.mxu1 %v3741_v37 }
 0x384   : > { %v1970_v12 = vpop.permute.xlu1 %1969  ;;  %2542 = vmatprep.subr.bf16.mxu1 %v3759_v0  ;;  %v3064_v0 = vld [vmem:[%s4196_s3 + $0x7c] ss:$20 sps:$4 sm:$0xff]  }
 0x385   : > { %v1982_v14 = vsel %vm626_vm1, %v1968_v2, %v1970_v12 }
 0x386   : > { %2508 = vmatmul.mubr.bf16.gmra.mrb[4].mxu1 %v3060_v1  ;;  %v3070_v1 = vld [vmem:[%s4196_s3 + $0x34] ss:$20 sps:$4 sm:$0xff]  }
 0x387   : > { %v1966_v10 = vpop.permute.xlu0 %1965  ;;  %2543 = vmatpush1.bf16.msra.mxu1 %v3755_v45  ;;  %2517 = vmatprep.mubr.bf16.mxu1 %v3061_v4  ;;  %v1977_v45 = vsel %vm626_vm1, %v1954_v35, %v1956_v43 }
 0x388   : > { %v1972_v33 = vpop.permute.xlu1 %1971  ;;  %2544 = vmatprep.subr.bf16.mxu1 %v3773_v18  ;;  %v1980_v18 = vsel %vm626_vm1, %v1962_v20, %v1964_v62  ;;  %v1981_v52 = vsel %vm626_vm1, %v1966_v10, %v1968_v2 }
 0x38b   : > { %v1976_v37 = vpop.permute.xlu0 %1975  ;;  %2545 = vmatpush1.bf16.msra.mxu1 %v3769_v17  ;;  %v1979_v17 = vsel %vm626_vm1, %v1960_v32, %v1962_v20  ;;  %v3067_v32 = vld [vmem:[%s4196_s3 + $0x8] ss:$20 sps:$4 sm:$0xff]  }
 0x38c   : > { %v2042_v9 = vpop.permute.xlu1 %2041  ;;  %2546 = vmatprep.subr.bf16.mxu1 %v1978_v8 }
 0x38e   : > { %2518 = vmatmul.mubr.bf16.gmra.mrb[8].mxu1 %v3063_v7 }
 0x38f   : > { %v2040_v27 = vpop.permute.xlu0 %2039  ;;  %2547 = vmatpush1.bf16.msra.mxu1 %v1977_v45  ;;  %2527 = vmatprep.mubr.bf16.mxu1 %v3064_v0  ;;  %v3073_v0 = vld [vmem:[%s4196_s3 + $0x5c] ss:$20 sps:$4 sm:$0xff]  }
 0x390   : > { %v2046_v28 = vpop.permute.xlu1 %2045  ;;  %2548 = vmatprep.subr.bf16.mxu1 %v1980_v18  ;;  %v2062_v19 = vsel %vm532_vm2, %v2040_v27, %v2042_v9 }
 0x393   : > { %v2038_v47 = vpop.permute.xlu0 %2037  ;;  %2549 = vmatpush1.bf16.msra.mxu1 %v1979_v17 }
 0x394   : > { %v2044_v50 = vpop.permute.xlu1 %2043  ;;  %2550 = vmatprep.subr.bf16.mxu1 %v1982_v14  ;;  %v2061_v21 = vsel %vm532_vm2, %v2038_v47, %v2040_v27  ;;  %v3076_v14 = vld [vmem:[%s4196_s3 + $0x84] ss:$20 sps:$4 sm:$0xff]  }
 0x395   : > { %v2063_v38 = vsel %vm532_vm2, %v2044_v50, %v2046_v28 }
 0x396   : > { %2528 = vmatmul.mubr.bf16.gmra.mrb[12].mxu1 %v3066_v13  ;;  %v3075_v13 = vld [vmem:[%s4196_s3 + $0x58] ss:$20 sps:$4 sm:$0xff]  }
 0x397   : > { %v2048_v60 = vpop.permute.xlu0 %2047  ;;  %2551 = vmatpush1.bf16.msra.mxu1 %v1981_v52  ;;  %2570 = vmatprep.mubr.bf16.mxu1 %v3069_v29 }
 0x398   : > { %v1974_v15 = vpop.permute.xlu1 %1973  ;;  %v2064_v22 = vsel %vm532_vm2, %v2046_v28, %v2048_v60 }
 0x399   : > { %v1983_v34 = vsel %vm626_vm1, %v1972_v33, %v1974_v15  ;;  %v1984_v51 = vsel %vm626_vm1, %v1974_v15, %v1976_v37  ;;  %v3072_v37 = vld [vmem:[%s4196_s3 + $0x30] ss:$20 sps:$4 sm:$0xff]  }
 0x39a   : > { %2552 = vmatprep.subr.bf16.mxu1 %v1984_v51  ;;  %v3079_v51 = vld [vmem:[%s4196_s3 + $0x10] ss:$20 sps:$4 sm:$0xff]  }
 0x39b   : > { %v2052_v53 = vpop.permute.xlu0 %2051  ;;  %2553 = vmatpush1.bf16.msra.mxu1 %v1983_v34  ;;  %v3078_v34 = vld [vmem:[%s4196_s3 + $0x80] ss:$20 sps:$4 sm:$0xff]  }
 0x39c   : > { %v2054_v25 = vpop.permute.xlu1 %2053  ;;  %2554 = vmatprep.subr.bf16.mxu1 %v2062_v19  ;;  %v3081_v19 = vld [vmem:[%s4196_s3 + $0x60] ss:$20 sps:$4 sm:$0xff]  }
 0x39d   : > { %v2066_v48 = vsel %vm532_vm2, %v2052_v53, %v2054_v25  ;;  %v3082_v25 = vld [vmem:[%s4196_s3 + $0x88] ss:$20 sps:$4 sm:$0xff]  }
 0x39f   : > { %v2050_v61 = vpop.permute.xlu0 %2049  ;;  %2555 = vmatpush1.bf16.msra.mxu1 %v2061_v21  ;;  %v2337_v21 = vld [vmem:[%s3157_s28] sm:$0xff] }
 0x3a0   : > { %v2056_v54 = vpop.permute.xlu1 %2055  ;;  %2556 = vmatprep.subr.bf16.mxu1 %v2064_v22  ;;  %v2065_v31 = vsel %vm532_vm2, %v2050_v61, %v2052_v53  ;;  %v3080_v53 = vld [vmem:[%s4196_s3 + $0x38] ss:$20 sps:$4 sm:$0xff]  }
 0x3a1   : > { %v2338_v61 = vld [vmem:[%s3157_s28 + $0x8] sm:$0xff] }
 0x3a3   : > { %v2060_v23 = vpop.permute.xlu0 %2059  ;;  %2557 = vmatpush1.bf16.msra.mxu1 %v2063_v38 }
 0x3a4   : > { %v3024_v55 = vpop.permute.xlu1 %3023  ;;  %2558 = vmatprep.subr.bf16.mxu1 %v2066_v48  ;;  %v2340_v48 = vld [vmem:[%s3157_s28 + $0x18] sm:$0xff] }
 0x3a5   : > { %v3025_v16 = vunpack.i.l.bf16 %v3024_v55  ;;  %v3026_v6 = vunpack.i.h.bf16 %v3024_v55 }
 0x3a7   : > { %v2112_v26 = vpop.permute.xlu0 %2111  ;;  %2559 = vmatpush1.bf16.msra.mxu1 %v2065_v31 }
 0x3a8   : > { %v2058_v11 = vpop.permute.xlu1 %2057  ;;  %v2134_v30 = vsel %vm952_vm7, %v2112_v26, %v3025_v16 }
 0x3a9   : > { %v2067_v39 = vsel %vm532_vm2, %v2056_v54, %v2058_v11  ;;  %v2068_v3 = vsel %vm532_vm2, %v2058_v11, %v2060_v23  ;;  %v2339_v54 = vld [vmem:[%s3157_s28 + $0x10] sm:$0xff] }
 0x3aa   : > { %2560 = vmatprep.subr.bf16.mxu1 %v2068_v3 }
 0x3ab   : > { %v2110_v36 = vpop.permute.xlu0 %2109  ;;  %2561 = vmatpush1.bf16.msra.mxu1 %v2067_v39 }
 0x3ac   : > { %v2118_v40 = vpop.permute.xlu1 %2117  ;;  %2562 = vmatprep.subr.bf16.mxu1 %v2134_v30  ;;  %v2133_v42 = vsel %vm952_vm7, %v2110_v36, %v2112_v26 }
 0x3ad   : > { %v2136_v43 = vsel %vm952_vm7, %v2118_v40, %v3026_v6  ;;  %v2341_v6 = vld [vmem:[%s3157_s28 + $0x20] sm:$0xff] }
 0x3af   : > { %v2116_v63 = vpop.permute.xlu0 %2115  ;;  %2563 = vmatpush1.bf16.msra.mxu1 %v2133_v42  ;;  %v2342_v42 = vld [vmem:[%s3157_s28 + $0x28] sm:$0xff] }
 0x3b0   : > { %v2124_v24 = vpop.permute.xlu1 %2123  ;;  %2564 = vmatprep.subr.bf16.mxu1 %v2136_v43  ;;  %v2135_v59 = vsel %vm952_vm7, %v2116_v63, %v2118_v40  ;;  %v2343_v43 = vld [vmem:[%s3157_s28 + $0x30] sm:$0xff] }
 0x3b3   : > { %v2126_v56 = vpop.permute.xlu0 %2125  ;;  %2565 = vmatpush1.bf16.msra.mxu1 %v2135_v59 }
 0x3b4   : > { %v2122_v41 = vpop.permute.xlu1 %2121  ;;  %v2138_v46 = vsel %vm952_vm7, %v2124_v24, %v2126_v56  ;;  %v2344_v56 = vld [vmem:[%s3157_s28 + $0x38] sm:$0xff] }
 0x3b5   : > { %v2137_v49 = vsel %vm952_vm7, %v2122_v41, %v2124_v24  ;;  %2566 = vmatprep.subr.bf16.mxu1 %v2138_v46 }
 0x3b7   : > { %v2130_v44 = vpop.permute.xlu0 %2129  ;;  %2567 = vmatpush1.bf16.msra.mxu1 %v2137_v49 }
 0x3b8   : > { %v2132_v57 = vpop.permute.xlu1 %2131 }
 0x3b9   : > { %v2140_v35 = vsel %vm952_vm7, %v2130_v44, %v2132_v57 }
 0x3ba   : > { %2568 = vmatprep.subr.bf16.mxu1 %v2140_v35 }
 0x3bb   : > { %v2128_v58 = vpop.permute.xlu0 %2127 }
 0x3bc   : > { %v2139_v20 = vsel %vm952_vm7, %v2128_v58, %v2130_v44  ;;  %v2196_v62 = vpop.permute.xlu1 %2195 }
 0x3bd   : > { %2569 = vmatpush1.bf16.msra.mxu1 %v2139_v20 }
 0x3bf   : > { %v2198_v2 = vpop.permute.xlu0 %2197 }
 0x3c0   : > { %v2194_v4 = vpop.permute.xlu1 %2193  ;;  %2571 = vmatmul.mubr.bf16.vlgmr.msra.gmra.mrb[0].mxu1 %v3067_v32  ;;  %v2218_v12 = vsel %vm349_vm0, %v2196_v62, %v2198_v2  ;;  %v2345_v2 = vld [vmem:[%s3157_s28 + $0x40] sm:$0xff] }
 0x3c1   : > { %v2217_v10 = vsel %vm349_vm0, %v2194_v4, %v2196_v62  ;;  %2611 = vmatprep.subr.bf16.mxu1 %v2218_v12  ;;  %2580 = vmatprep.mubr.bf16.mxu1 %v3070_v1  ;;  %v2346_v4 = vld [vmem:[%s3157_s28 + $0x48] sm:$0xff] }
 0x3c2   : > { %2612 = vmatpush1.bf16.msra.mxu1 %v2217_v10  ;;  %v2347_v10 = vld [vmem:[%s3157_s28 + $0x50] sm:$0xff] }
 0x3c3   : > { %v2202_v33 = vpop.permute.xlu0 %2201 }
 0x3c4   : > { %v2204_v7 = vpop.permute.xlu1 %2203 }
 0x3c5   : > { %v2220_v8 = vsel %vm349_vm0, %v2202_v33, %v2204_v7 }
 0x3c6   : > { %2613 = vmatprep.subr.bf16.mxu1 %v2220_v8 }
 0x3c7   : > { %v2200_v9 = vpop.permute.xlu0 %2199 }
 0x3c8   : > { %v2219_v45 = vsel %vm349_vm0, %v2200_v9, %v2202_v33  ;;  %v2208_v27 = vpop.permute.xlu1 %2207  ;;  %2581 = vmatmul.mubr.bf16.gmra.mrb[4].mxu1 %v3072_v37  ;;  %v2348_v37 = vld [vmem:[%s3157_s28 + $0x58] sm:$0xff] }
 0x3c9   : > { %2614 = vmatpush1.bf16.msra.mxu1 %v2219_v45  ;;  %2590 = vmatprep.mubr.bf16.mxu1 %v3073_v0 }
 0x3cb   : > { %v2210_v18 = vpop.permute.xlu0 %2209 }
 0x3cc   : > { %v2206_v28 = vpop.permute.xlu1 %2205  ;;  %v2222_v17 = vsel %vm349_vm0, %v2208_v27, %v2210_v18 }
 0x3cd   : > { %v2221_v47 = vsel %vm349_vm0, %v2206_v28, %v2208_v27  ;;  %2615 = vmatprep.subr.bf16.mxu1 %v2222_v17 }
 0x3ce   : > { %2616 = vmatpush1.bf16.msra.mxu1 %v2221_v47 }
 0x3cf   : > { %v2214_v29 = vpop.permute.xlu0 %2213 }
 0x3d0   : > { %v2216_v50 = vpop.permute.xlu1 %2215  ;;  %2591 = vmatmul.mubr.bf16.gmra.mrb[8].mxu1 %v3075_v13 }
 0x3d1   : > { %v2224_v52 = vsel %vm349_vm0, %v2214_v29, %v2216_v50  ;;  %2600 = vmatprep.mubr.bf16.mxu1 %v3076_v14  ;;  %v2350_v50 = vld [vmem:[%s3157_s28 + $0x68] sm:$0xff] }
 0x3d2   : > { %2617 = vmatprep.subr.bf16.mxu1 %v2224_v52 }
 0x3d3   : > { %v2212_v60 = vpop.permute.xlu0 %2211 }
 0x3d4   : > { %v2223_v15 = vsel %vm349_vm0, %v2212_v60, %v2214_v29  ;;  %v2349_v29 = vld [vmem:[%s3157_s28 + $0x60] sm:$0xff]  ;;  %v2351_v60 = vld [vmem:[%s3157_s28 + $0x70] sm:$0xff] }
 0x3d5   : > { %2618 = vmatpush1.bf16.msra.mxu1 %v2223_v15 }
 0x3d8   : > { %2601 = vmatmul.mubr.bf16.gmra.mrb[12].mxu1 %v3078_v34 }
 0x3d9   : > { %2643 = vmatprep.mubr.bf16.mxu1 %v3092_v5 }
 0x3e0   : > { %2873 = vmatmul.mubr.msk.bf16.vlgmr.msra.gmra.mrb[0].mxu1 %vm1313_vm8, %v3079_v51  ;;  %v2352_v51 = vld [vmem:[%s3157_s28 + $0x78] sm:$0xff] }
 0x3e1   : > { %2653 = vmatprep.mubr.bf16.mxu1 %v3092_v5  ;;  %v2695_v55 = vpop.permute.xlu1 %2694 }
 0x3e4   : > { %v2700_v39 = vpop.permute.xlu0 %2699 }
 0x3e5   : > { %v2705_v41 = vpop.permute.xlu1 %2704 }
 0x3e8   : > { %2874 = vmatmul.mubr.msk.bf16.gmra.mrb[4].mxu1 %vm1313_vm8, %v3080_v53  ;;  %v2710_v58 = vpop.permute.xlu0 %2709 }
 0x3e9   : > { %2663 = vmatprep.mubr.bf16.mxu1 %v3092_v5  ;;  %v2715_v8 = vpop.permute.xlu1 %2714 }
 0x3ec   : > { %v2720_v28 = vpop.permute.xlu0 %2719 }
 0x3ed   : > { %v2725_v53 = vpop.permute.xlu1 %2724 }
 0x3f0   : > { %2875 = vmatmul.mubr.msk.bf16.gmra.mrb[8].mxu1 %vm1313_vm8, %v3081_v19 }
 0x3f1   : > { %2673 = vmatprep.mubr.bf16.mxu1 %v3092_v5 }
 0x3f8   : > { %2876 = vmatmul.mubr.msk.bf16.gmra.mrb[12].mxu1 %vm1313_vm8, %v3082_v25 }
 0x4b3   : > { %v2645_v22 = vpop.f32.mrb[0].mxu1 }
 0x4b4   : > { %v2897_v38 = vadd.f32 %v2645_v22, %v2337_v21  ;;  %v2647_v23 = vpop.f32.mrb[1].mxu1 }
 0x4b5   : > { %v2898_v5 = vadd.f32 %v2647_v23, %v2338_v61  ;;  %v2649_v31 = vpop.f32.mrb[2].mxu1 }
 0x4b6   : > { %v2732_v16 = vadd.f32 %v2897_v38, %v2695_v55  ;;  %v2899_v26 = vadd.f32 %v2649_v31, %v2339_v54  ;;  %v2651_v11 = vpop.f32.mrb[3].mxu1  ;;  %v2730_v54 = vpop.permute.xlu0 %2729 }
 0x4b7   : > { %v2733_v3 = vadd.f32 %v2898_v5, %v2695_v55  ;;  %v2900_v36 = vadd.f32 %v2651_v11, %v2340_v48 }
 0x4b8   : > { %2748 = vst [vmem:[%s4160_s19] sm:$0xff] %v2732_v16  ;;  %v2734_v30 = vadd.f32 %v2899_v26, %v2700_v39 }
 0x4b9   : > { %2749 = vst [vmem:[%s4160_s19 + $0x8] sm:$0xff] %v2733_v3  ;;  %v2735_v40 = vadd.f32 %v2900_v36, %v2700_v39 }
 0x4ba   : > { %2750 = vst [vmem:[%s4160_s19 + $0x10] sm:$0xff] %v2734_v30 }
 0x4bb   : > { %2751 = vst [vmem:[%s4160_s19 + $0x18] sm:$0xff] %v2735_v40  ;;  %v2655_v63 = vpop.f32.mrb[4].mxu1 }
 0x4bc   : > { %v2901_v24 = vadd.f32 %v2655_v63, %v2341_v6  ;;  %v2657_v59 = vpop.f32.mrb[5].mxu1 }
 0x4bd   : > { %v2902_v46 = vadd.f32 %v2657_v59, %v2342_v42  ;;  %v2659_v49 = vpop.f32.mrb[6].mxu1 }
 0x4be   : > { %v2736_v44 = vadd.f32 %v2901_v24, %v2705_v41  ;;  %v2903_v57 = vadd.f32 %v2659_v49, %v2343_v43  ;;  %v2661_v35 = vpop.f32.mrb[7].mxu1 }
 0x4bf   : > { %v2737_v20 = vadd.f32 %v2902_v46, %v2705_v41  ;;  %v2904_v62 = vadd.f32 %v2661_v35, %v2344_v56 }
 0x4c0   : > { %2752 = vst [vmem:[%s4160_s19 + $0x20] sm:$0xff] %v2736_v44  ;;  %v2738_v32 = vadd.f32 %v2903_v57, %v2710_v58 }
 0x4c1   : > { %2753 = vst [vmem:[%s4160_s19 + $0x28] sm:$0xff] %v2737_v20  ;;  %v2739_v1 = vadd.f32 %v2904_v62, %v2710_v58 }
 0x4c2   : > { %2754 = vst [vmem:[%s4160_s19 + $0x30] sm:$0xff] %v2738_v32 }
 0x4c3   : > { %2755 = vst [vmem:[%s4160_s19 + $0x38] sm:$0xff] %v2739_v1  ;;  %v2665_v12 = vpop.f32.mrb[8].mxu1 }
 0x4c4   : > { %v2905_v33 = vadd.f32 %v2665_v12, %v2345_v2  ;;  %v2667_v7 = vpop.f32.mrb[9].mxu1 }
 0x4c5   : > { %v2906_v0 = vadd.f32 %v2667_v7, %v2346_v4  ;;  %v2669_v9 = vpop.f32.mrb[10].mxu1 }
 0x4c6   : > { %v2740_v45 = vadd.f32 %v2905_v33, %v2715_v8  ;;  %v2907_v27 = vadd.f32 %v2669_v9, %v2347_v10  ;;  %v2671_v18 = vpop.f32.mrb[11].mxu1 }
 0x4c7   : > { %v2741_v17 = vadd.f32 %v2906_v0, %v2715_v8  ;;  %v2908_v13 = vadd.f32 %v2671_v18, %v2348_v37 }
 0x4c8   : > { %2756 = vst [vmem:[%s4160_s19 + $0x40] sm:$0xff] %v2740_v45  ;;  %v2742_v47 = vadd.f32 %v2907_v27, %v2720_v28 }
 0x4c9   : > { %2757 = vst [vmem:[%s4160_s19 + $0x48] sm:$0xff] %v2741_v17  ;;  %v2743_v14 = vadd.f32 %v2908_v13, %v2720_v28 }
 0x4ca   : > { %2758 = vst [vmem:[%s4160_s19 + $0x50] sm:$0xff] %v2742_v47 }
 0x4cb   : > { %2759 = vst [vmem:[%s4160_s19 + $0x58] sm:$0xff] %v2743_v14  ;;  %v2675_v52 = vpop.f32.mrb[12].mxu1 }
 0x4cc   : > { %v2909_v15 = vadd.f32 %v2675_v52, %v2349_v29  ;;  %v2677_v34 = vpop.f32.mrb[13].mxu1 }
 0x4cd   : > { %v2910_v19 = vadd.f32 %v2677_v34, %v2350_v50  ;;  %v2679_v25 = vpop.f32.mrb[14].mxu1 }
 0x4ce   : > { %v2744_v21 = vadd.f32 %v2909_v15, %v2725_v53  ;;  %v2911_v61 = vadd.f32 %v2679_v25, %v2351_v60  ;;  %v2681_v22 = vpop.f32.mrb[15].mxu1 }
 0x4cf   : > { %v2745_v38 = vadd.f32 %v2910_v19, %v2725_v53  ;;  %v2912_v23 = vadd.f32 %v2681_v22, %v2352_v51 }
 0x4d0   : > { %2760 = vst [vmem:[%s4160_s19 + $0x60] sm:$0xff] %v2744_v21  ;;  %v2746_v48 = vadd.f32 %v2911_v61, %v2730_v54 }
 0x4d1   : > { %2761 = vst [vmem:[%s4160_s19 + $0x68] sm:$0xff] %v2745_v38  ;;  %v2747_v55 = vadd.f32 %v2912_v23, %v2730_v54 }
 0x4d2   : > { %2762 = vst [vmem:[%s4160_s19 + $0x70] sm:$0xff] %v2746_v48 }
 0x4d3   : > { %2763 = vst [vmem:[%s4160_s19 + $0x78] sm:$0xff] %v2747_v55 }
 0x4d4 PF: > { %s16_s21 = sadd.s32 1, %s3089_s21  }
 0x4d5   : > { %p13_p4 = scmp.ge.s32.totalorder %s16_s21, 4  }
 0x4d7   :  { %15 = sbr.rel (!%p13_p4) target bundleno = 1 (0x1), region = 74 }

</bundles_post_ra>
